<compile_context>
chip_gen: v7x
topology: tpu7x:2x2x1
jax: 0.10.0
libtpu: 0.0.40
codegen_flags: <defaults>
</compile_context>

<pallas_src>
import jax
import jax.numpy as jnp
from jax.experimental import pallas as pl
from jax.experimental.pallas import tpu as pltpu


# ----------------------------- small helpers (kernel-safe) -----------------------------

def _pad_hw_zero(x):
    """Zero-pad the two spatial dims of (..., H, W, C) by 1 on each side (concat-based)."""
    h_ax, w_ax = x.ndim - 3, x.ndim - 2
    zr = jnp.zeros(x.shape[:h_ax] + (1,) + x.shape[h_ax + 1:], x.dtype)
    x = jnp.concatenate([zr, x, zr], axis=h_ax)
    zc = jnp.zeros(x.shape[:w_ax] + (1,) + x.shape[w_ax + 1:], x.dtype)
    x = jnp.concatenate([zc, x, zc], axis=w_ax)
    return x


def _upsample2x_nearest(y):
    """(H, W, C) -> (2H, 2W, C) nearest-neighbour upsample (broadcast + flat reshapes)."""
    H, W, C = y.shape
    y = jnp.broadcast_to(y[:, None, :, :], (H, 2, W, C)).reshape(-1, C).reshape(2 * H, W, C)
    y = jnp.broadcast_to(y[:, :, None, :], (2 * H, W, 2, C)).reshape(-1, C).reshape(2 * H, 2 * W, C)
    return y


def _divisor_at_most(n, target):
    t = max(1, min(n, int(target)))
    while n % t:
        t -= 1
    return t


def _pick_tile_rows(n, target):
    # largest divisor of n that is <= target and (multiple of 8 or == n)  [out-block sublane rule]
    for t in range(min(n, int(target)), 0, -1):
        if n % t == 0 and (t % 8 == 0 or t == n):
            return t
    return n


def _cp(sem, est_bytes):
    """CompilerParams with an explicit scoped-VMEM limit (don't rely on per-chip defaults)."""
    limit = int(min(max(int(est_bytes) + (8 << 20), 32 << 20), 100 << 20))
    return pltpu.CompilerParams(dimension_semantics=sem, vmem_limit_bytes=limit)


def _halo_rows(x_ref, r0, rows_n, t, nt):
    """(rows_n+2, W, Cin) strip: tile body rows plus one halo row above/below, zeroed at edges."""
    H = x_ref.shape[0]
    body = x_ref[pl.ds(r0, rows_n), :, :]
    top_i = jnp.maximum(r0 - 1, 0)
    bot_i = jnp.minimum(r0 + rows_n, H - 1)
    top_m = jnp.where(t > 0, 1.0, 0.0).astype(x_ref.dtype)
    bot_m = jnp.where(t < nt - 1, 1.0, 0.0).astype(x_ref.dtype)
    top = x_ref[pl.ds(top_i, 1), :, :] * top_m
    bot = x_ref[pl.ds(bot_i, 1), :, :] * bot_m
    return jnp.concatenate([top, body, bot], axis=0)


# ----------------------------- Pallas kernels -----------------------------

def linear_kernel(x_ref, w_ref, o_ref):
    # (B, 512) @ (512, 2048), bias=False; bf16 operands, f32 accumulate, bf16 out.
    o_ref[...] = jnp.dot(x_ref[...], w_ref[...],
                         preferred_element_type=jnp.float32).astype(o_ref.dtype)


def block_small_kernel(x_ref, w_ref, b_ref, o_ref):
    # Fused Conv3x3(pad=1)+bias + InstanceNorm + ReLU + nearest x2 upsample.
    # Batch folded into the matmul M (small spatial layers); K = 3*Cin per matmul.
    B, H, W, C = x_ref.shape
    Cout = w_ref.shape[-1]
    xp = _pad_hw_zero(x_ref[...])                                                   # (B,H+2,W+2,C) bf16
    x_cat = jnp.concatenate([xp[:, :, dx:dx + W, :] for dx in range(3)], axis=-1)   # (B,H+2,W,3C)
    acc = jnp.zeros((B * H * W, Cout), jnp.float32)
    for dy in range(3):
        acc = acc + jnp.dot(x_cat[:, dy:dy + H].reshape(B * H * W, 3 * C), w_ref[dy],
                            preferred_element_type=jnp.float32)
    acc = acc + b_ref[...]                                                          # (1,Cout) f32
    y = acc.reshape(B, H * W, Cout)
    for bi in range(B):                                                             # B static & small
        yb = y[bi]                                                                  # (H*W, Cout) f32
        mean = jnp.mean(yb, axis=0, keepdims=True)
        var = jnp.mean(yb * yb, axis=0, keepdims=True) - mean * mean                # one-pass stats
        yb = (yb - mean) * jax.lax.rsqrt(var + 1e-5)
        yb = jnp.maximum(yb, 0.0).astype(o_ref.dtype).reshape(H, W, Cout)
        o_ref[bi] = _upsample2x_nearest(yb)                                         # (2H,2W,Cout)


def make_conv_tiled_kernel(with_stats, th):
    """Row-tiled Conv3x3(pad=1)+bias.  The halo strip is built per tile from the resident image
    (no padded scratch, no cross-tile state in the no-stats case).  If with_stats: also accumulates
    per-(image,channel) sum / sum-of-squares across row tiles (f32, from the pre-rounding acc)."""
    def kernel(x_ref, w_ref, b_ref, o_ref, *maybe_stats):
        t = pl.program_id(1)
        nt = pl.num_programs(1)
        H, W, Cin = x_ref.shape
        Cout = o_ref.shape[-1]

        r0 = pl.multiple_of(t * th, th)
        rows = _halo_rows(x_ref, r0, th, t, nt)                                      # (th+2,W,Cin)
        zc = jnp.zeros((th + 2, 1, Cin), x_ref.dtype)
        xp = jnp.concatenate([zc, rows, zc], axis=1)                                 # (th+2,W+2,Cin)
        # pack the three dx taps into the contraction: one lane-concat, 3 matmuls with K = 3*Cin.
        x_cat = jnp.concatenate([xp[:, dx:dx + W, :] for dx in range(3)], axis=-1)   # (th+2,W,3Cin)
        acc = jnp.zeros((th * W, Cout), jnp.float32)
        for dy in range(3):
            acc = acc + jnp.dot(x_cat[dy:dy + th].reshape(th * W, 3 * Cin), w_ref[dy],
                                preferred_element_type=jnp.float32)
        acc = acc + b_ref[...]                                                       # (1,Cout) f32
        o_ref[...] = acc.reshape(th, W, Cout).astype(o_ref.dtype)

        if with_stats:
            stats_ref = maybe_stats[0]
            contrib = jnp.concatenate([jnp.sum(acc, axis=0, keepdims=True),
                                       jnp.sum(acc * acc, axis=0, keepdims=True)], axis=0)

            @pl.when(t == 0)
            def _():
                stats_ref[...] = contrib

            @pl.when(t > 0)
            def _():
                stats_ref[...] = stats_ref[...] + contrib
    return kernel


def make_norm_relu_up_kernel(inv_n):
    """InstanceNorm (from full-image sum/sumsq) + ReLU + fused nearest x2 upsample, per row tile."""
    def kernel(y_ref, s_ref, o_ref):
        mean = s_ref[0:1, :] * inv_n                        # (1, C) f32
        var = s_ref[1:2, :] * inv_n - mean * mean
        scale = jax.lax.rsqrt(var + 1e-5)
        y = (y_ref[...].astype(jnp.float32) - mean) * scale  # (th, W, C) f32
        y = jnp.maximum(y, 0.0).astype(o_ref.dtype)
        o_ref[...] = _upsample2x_nearest(y)                  # (2th, 2W, C)
    return kernel


def make_post_conv_kernel(ts):
    """Row-tiled Conv2d(64->1, 3x3, pad=1)+bias producing the pre-softplus (ts, S) scalar map.
    Channel contraction runs on the MXU: K = 3*64, weights zero-padded to 128 output lanes,
    one lane reduce recovers the single real output channel."""
    def kernel(x_ref, w_ref, b_ref, o_ref):
        t = pl.program_id(1)
        nt = pl.num_programs(1)
        S, _, Cin = x_ref.shape
        Npad = w_ref.shape[-1]                               # 128 (only column 0 is nonzero)

        r0 = pl.multiple_of(t * ts, ts)
        rows = _halo_rows(x_ref, r0, ts, t, nt)                                       # (ts+2,S,Cin)
        zc = jnp.zeros((ts + 2, 1, Cin), x_ref.dtype)
        xp = jnp.concatenate([zc, rows, zc], axis=1)                                  # (ts+2,S+2,Cin)
        x_cat = jnp.concatenate([xp[:, dx:dx + S, :] for dx in range(3)], axis=-1)    # (ts+2,S,3Cin)
        acc = jnp.zeros((ts * S, Npad), jnp.float32)
        for dy in range(3):
            acc = acc + jnp.dot(x_cat[dy:dy + ts].reshape(ts * S, 3 * Cin).astype(jnp.float32),
                                w_ref[dy], preferred_element_type=jnp.float32)
        # lane reduce: all padded columns are zero, so the sum is exactly output channel 0
        o_ref[...] = jnp.sum(acc.reshape(ts, S, Npad), axis=-1) + b_ref[...]
    return kernel


def post_finish_kernel(m_ref, o_ref):
    """softplus + symmetrise + zero diagonal on the (small) resident pre-softplus map."""
    S = m_ref.shape[0]
    p = jnp.logaddexp(m_ref[...], 0.0)                       # softplus, (S, S) f32
    y = 0.5 * (p + p.T)
    row_g = jax.lax.broadcasted_iota(jnp.int32, (S, S), 0)
    col_g = jax.lax.broadcasted_iota(jnp.int32, (S, S), 1)
    o_ref[...] = jnp.where(row_g == col_g, 0.0, y)


# ----------------------------- pallas_call wrappers -----------------------------------

def linear(x, w):
    B, N = x.shape[0], w.shape[1]
    return pl.pallas_call(
        linear_kernel,
        out_shape=jax.ShapeDtypeStruct((B, N), jnp.bfloat16),
    )(x, w)


def block_conv_small(x, w_packed, b):
    B, H, W, C = x.shape
    est = 3 * x.nbytes + 2 * w_packed.nbytes + 4 * B * H * W * C * (4 + 2) + 4 * B * 4 * H * W * C * 2
    return pl.pallas_call(
        block_small_kernel,
        out_shape=jax.ShapeDtypeStruct((B, 2 * H, 2 * W, C), jnp.bfloat16),
        compiler_params=_cp(None, est),
    )(x, w_packed, b)


def conv3x3_tiled(x, w_packed, b, cout, th, with_stats, out_dtype):
    """x: (B,H,W,Cin) bf16; w_packed: (3, 3*Cin, cout) bf16; b: (1, cout) f32."""
    B, H, W, Cin = x.shape
    nt = H // th
    # TODO(synk): for depth>=5 images on v7x (64 MiB VMEM) the whole-image-resident input should be
    # replaced with halo row DMA (memory_space=pl.ANY + make_async_copy, double-buffered).
    conv_shape = jax.ShapeDtypeStruct((B, H, W, cout), out_dtype)
    conv_spec = pl.BlockSpec((pl.Squeezed(), th, W, cout), lambda bi, t: (bi, t, 0, 0))
    osz = jnp.dtype(out_dtype).itemsize
    est = (2 * x.nbytes + 2 * w_packed.nbytes
           + 3 * th * W * cout * osz + 2 * th * W * cout * 4
           + 3 * (th + 2) * (W + 2) * 3 * Cin * 2)
    if with_stats:
        out_shape = (conv_shape, jax.ShapeDtypeStruct((B, 2, cout), jnp.float32))
        out_specs = (conv_spec,
                     pl.BlockSpec((pl.Squeezed(), 2, cout), lambda bi, t: (bi, 0, 0)))
        sem = ("parallel", "arbitrary")      # stats block is revisited across row tiles
    else:
        out_shape, out_specs = conv_shape, conv_spec
        sem = ("parallel", "parallel")       # stateless per tile -> megacore-shardable on v7x
    return pl.pallas_call(
        make_conv_tiled_kernel(with_stats, th),
        out_shape=out_shape,
        grid=(B, nt),
        in_specs=[
            pl.BlockSpec((pl.Squeezed(), H, W, Cin), lambda bi, t: (bi, 0, 0, 0)),  # resident / image
            pl.BlockSpec((3, 3 * Cin, cout), lambda bi, t: (0, 0, 0)),              # resident weights
            pl.BlockSpec((1, cout), lambda bi, t: (0, 0)),
        ],
        out_specs=out_specs,
        compiler_params=_cp(sem, est),
    )(x, w_packed, b)


def norm_relu_up(y, stats, th):
    B, H, W, C = y.shape
    nt = H // th
    inv_n = 1.0 / float(H * W)
    est = 3 * th * W * C * (2 + 4) + 3 * 4 * th * W * C * 2 + 4 * 2 * C * 4
    return pl.pallas_call(
        make_norm_relu_up_kernel(inv_n),
        out_shape=jax.ShapeDtypeStruct((B, 2 * H, 2 * W, C), jnp.bfloat16),
        grid=(B, nt),
        in_specs=[
            pl.BlockSpec((pl.Squeezed(), th, W, C), lambda bi, t: (bi, t, 0, 0)),
            pl.BlockSpec((pl.Squeezed(), 2, C), lambda bi, t: (bi, 0, 0)),
        ],
        out_specs=pl.BlockSpec((pl.Squeezed(), 2 * th, 2 * W, C), lambda bi, t: (bi, t, 0, 0)),
        compiler_params=_cp(("parallel", "parallel"), est),
    )(y, stats)


def post_conv(x, w_pad, b, ts):
    """x: (B,S,S,64) bf16; w_pad: (3, 3*64, 128) f32 (only col 0 nonzero); b: (1,1) f32
    -> (B,S,S) f32 pre-softplus scalar map."""
    B, S, _, Cin = x.shape
    nt = S // ts
    est = (2 * x.nbytes + 2 * w_pad.nbytes + 3 * ts * S * 4
           + 2 * ts * S * 128 * 4 + 3 * (ts + 2) * (S + 2) * 3 * Cin * 4)
    return pl.pallas_call(
        make_post_conv_kernel(ts),
        out_shape=jax.ShapeDtypeStruct((B, S, S), jnp.float32),
        grid=(B, nt),
        in_specs=[
            pl.BlockSpec((pl.Squeezed(), S, S, Cin), lambda bi, t: (bi, 0, 0, 0)),
            pl.BlockSpec((3, 3 * Cin, 128), lambda bi, t: (0, 0, 0)),
            pl.BlockSpec((1, 1), lambda bi, t: (0, 0)),
        ],
        out_specs=pl.BlockSpec((pl.Squeezed(), ts, S), lambda bi, t: (bi, t, 0)),
        compiler_params=_cp(("parallel", "parallel"), est),
    )(x, w_pad, b)


def post_finish(m):
    B, S, _ = m.shape
    est = 8 * S * S * 4
    return pl.pallas_call(
        post_finish_kernel,
        out_shape=jax.ShapeDtypeStruct((B, S, S), jnp.float32),
        grid=(B,),
        in_specs=[pl.BlockSpec((pl.Squeezed(), S, S), lambda bi: (bi, 0, 0))],
        out_specs=pl.BlockSpec((pl.Squeezed(), S, S), lambda bi: (bi, 0, 0)),
        compiler_params=_cp(("parallel",), est),
    )(m)


# ----------------------------- XLA glue -----------------------------------------------

def pixel_shuffle_nhwc(x, r):
    # PyTorch pixel_shuffle: out[b, c, h*r+i, w*r+j] = in[b, c*r*r + i*r + j, h, w]
    B, H, W, Cr2 = x.shape
    C = Cr2 // (r * r)
    x = x.reshape(B, H, W, C, r, r)
    x = jnp.transpose(x, (0, 1, 4, 2, 5, 3))
    return x.reshape(B, H * r, W * r, C)


# ----------------------------- forward ------------------------------------------------

def stupid_generator_forward(sample, params, depth, force_tiled_blocks=False):
    B = sample.shape[0]
    z = linear(sample.astype(jnp.bfloat16), params["pre_w"])       # (B, 2048) bf16, NHWC column order
    out = z.reshape(B, 4, 4, 128)                                  # channels-last directly (no transpose)

    for idx in range(depth):
        H, W = out.shape[1], out.shape[2]
        wp, bb = params["block_w"][idx], params["block_b"][idx]
        if H * W <= 1024 and not force_tiled_blocks:
            # small-spatial layers: batch folded into M, fully fused conv+IN+ReLU+upsample
            out = block_conv_small(out, wp, bb)
        else:
            # large layers: row-tiled conv (bf16 pre-norm writeback) with two-pass InstanceNorm
            th = _divisor_at_most(H, max(1, min(max(H // 2, 1), max(8, 2048 // W))))
            y, stats = conv3x3_tiled(out, wp, bb, 128, th, with_stats=True, out_dtype=jnp.bfloat16)
            out = norm_relu_up(y, stats, th)

    # inflate Conv2d(128 -> 576), row-tiled (its whole-image output never materialises in VMEM)
    H, W = out.shape[1], out.shape[2]
    th = _divisor_at_most(H, max(1, min(max(H // 2, 1), max(8, 2048 // W))))
    out = conv3x3_tiled(out, params["inf_w"], params["inf_b"], 576, th,
                        with_stats=False, out_dtype=jnp.bfloat16)
    # TODO(synk): fold pixel_shuffle into the inflate conv out_specs (scatter the 9 pre-permuted
    # 64-channel groups with strided stores) to remove this full HBM pass over the largest activation.
    out = pixel_shuffle_nhwc(out, 3)                               # (B, 3H, 3W, 64) bf16

    S = out.shape[1]
    ts = _pick_tile_rows(S, max(8, min(64, (8 << 20) // max(S * 512, 1))))
    m = post_conv(out, params["post_w"], params["post_b"], ts)     # (B, S, S) f32, pre-softplus
    y = post_finish(m)                                             # softplus + symmetrise + zero diag
    return (y.reshape(B, 1, S, S),)


# ----------------------------- parameters ---------------------------------------------

def init_params(key, depth):
    nkeys = 1 + 2 * depth + 4
    keys = iter(jax.random.split(key, nkeys))

    def u(kk, shape, fan_in):
        bound = 1.0 / jnp.sqrt(jnp.float32(fan_in))
        return jax.random.uniform(kk, shape, jnp.float32, -bound, bound)

    # preprocess Linear(512 -> 2048, bias=False): columns permuted from PyTorch's (C=128,4,4)
    # output order to NHWC (4,4,C) so the matmul result reshapes straight to (B,4,4,128).
    w_pre = u(next(keys), (512, 128, 4, 4), 512)
    w_pre = jnp.transpose(w_pre, (0, 2, 3, 1)).reshape(512, 128 * 4 * 4)
    params = {"pre_w": w_pre.astype(jnp.bfloat16), "block_w": [], "block_b": []}
    for _ in range(depth):
        fan = 128 * 9
        w = u(next(keys), (3, 3, 128, 128), fan)                    # HWIO
        params["block_w"].append(w.reshape(3, 3 * 128, 128).astype(jnp.bfloat16))  # dx packed into K
        params["block_b"].append(u(next(keys), (1, 128), fan))
    fan = 128 * 9
    w = u(next(keys), (3, 3, 128, 576), fan)
    params["inf_w"] = w.reshape(3, 3 * 128, 576).astype(jnp.bfloat16)
    params["inf_b"] = u(next(keys), (1, 576), fan)
    fan = 64 * 9
    w_post = u(next(keys), (3, 3, 64), fan)                         # Cout=1 squeezed, f32
    params["post_w_hwio"] = w_post
    w192 = w_post.reshape(3, 3 * 64)                                # dx packed into K (matches x_cat)
    params["post_w"] = jnp.zeros((3, 3 * 64, 128), jnp.float32).at[:, :, 0].set(w192)
    params["post_b"] = u(next(keys), (1, 1), fan)
    return params


# ----------------------------- pure-JAX reference --------------------------------------

def reference_forward(sample, params, depth):
    f32, bf16 = jnp.float32, jnp.bfloat16

    def conv3x3_ref(x, w4, bias):
        B, H, W, _ = x.shape
        xp = jnp.pad(x, ((0, 0), (1, 1), (1, 1), (0, 0)))
        out = jnp.zeros((B, H, W, w4.shape[-1]), f32)
        for dy in range(3):
            for dx in range(3):
                out = out + jnp.einsum('bhwc,co->bhwo', xp[:, dy:dy + H, dx:dx + W, :], w4[dy, dx],
                                       preferred_element_type=f32)
        return out + bias.reshape(1, 1, 1, -1).astype(f32)

    z = jnp.dot(sample.astype(bf16), params["pre_w"], preferred_element_type=f32).astype(bf16)
    out = z.reshape(-1, 4, 4, 128)
    for idx in range(depth):
        w4 = params["block_w"][idx].reshape(3, 3, 128, 128)
        y = conv3x3_ref(out, w4, params["block_b"][idx])
        mean = jnp.mean(y, axis=(1, 2), keepdims=True)
        var = jnp.mean(y * y, axis=(1, 2), keepdims=True) - mean * mean
        y = (y - mean) * jax.lax.rsqrt(var + 1e-5)
        y = jnp.maximum(y, 0.0).astype(bf16)
        out = jnp.repeat(jnp.repeat(y, 2, axis=1), 2, axis=2)
    w4 = params["inf_w"].reshape(3, 3, 128, 576)
    y = conv3x3_ref(out, w4, params["inf_b"]).astype(bf16)
    out = pixel_shuffle_nhwc(y, 3)

    B, S = out.shape[0], out.shape[1]
    xp = jnp.pad(out.astype(f32), ((0, 0), (1, 1), (1, 1), (0, 0)))
    acc = jnp.zeros((B, S, S), f32)
    for dy in range(3):
        for dx in range(3):
            acc = acc + jnp.einsum('bhwc,c->bhw', xp[:, dy:dy + S, dx:dx + S, :],
                                   params["post_w_hwio"][dy, dx])
    acc = acc + params["post_b"][0, 0]
    y = jnp.logaddexp(acc, 0.0)
    y = 0.5 * (y + jnp.swapaxes(y, 1, 2))
    eye = jnp.eye(S, dtype=bool)
    y = jnp.where(eye[None, :, :], 0.0, y)
    return y.reshape(B, 1, S, S)


# ----------------------------- main ----------------------------------------------------

if __name__ == "__main__":
    depth = 2          # module default is 6; small depth keeps the demo shapes small (S = 12 * 2**depth)
    batch = 2

    key = jax.random.PRNGKey(0)
    pkey, skey = jax.random.split(key)
    params = init_params(pkey, depth)
    sample = jax.random.normal(skey, (batch, 512), jnp.float32)

    (out,) = stupid_generator_forward(sample, params, depth)
    out = jax.block_until_ready(out)

    S = 4 * (2 ** depth) * 3
    assert out.shape == (batch, 1, S, S), out.shape
    # structural checks: symmetric in the last two dims, zero diagonal (as in the PyTorch module)
    assert bool(jnp.allclose(out, jnp.swapaxes(out, -1, -2), atol=1e-5))
    assert float(jnp.max(jnp.abs(jnp.diagonal(out[:, 0], axis1=-2, axis2=-1)))) == 0.0
    # numerics vs. a pure-JAX reference of the same (bf16-operand) forward
    ref = reference_forward(sample, params, depth)
    assert bool(jnp.allclose(out, ref, atol=1e-2, rtol=1e-2))

    # also exercise the spatially-tiled conv + two-pass InstanceNorm path used for large layers
    (out_t,) = stupid_generator_forward(sample, params, depth, force_tiled_blocks=True)
    out_t = jax.block_until_ready(out_t)
    assert bool(jnp.allclose(out_t, ref, atol=1e-2, rtol=1e-2))

    print("KERNEL_OK")
</pallas_src>

<mosaic_0001>
module attributes {stable_mosaic.version = 11 : i64} {
  func.func @linear_kernel(%arg0: memref<2x512xbf16, #tpu.memory_space<vmem>>, %arg1: memref<512x2048xbf16, #tpu.memory_space<vmem>>, %arg2: memref<2x2048xbf16, #tpu.memory_space<vmem>>) attributes {dimension_semantics = [], scalar_prefetch = 0 : i64, scratch_operands = 0 : i64, tpu.core_type = #tpu.core_type<tc>} {
    %c0 = arith.constant 0 : index
    %c0_0 = arith.constant 0 : index
    %0 = vector.load %arg0[%c0, %c0_0] : memref<2x512xbf16, #tpu.memory_space<vmem>>, vector<2x512xbf16>
    %c0_1 = arith.constant 0 : index
    %c0_2 = arith.constant 0 : index
    %1 = vector.load %arg1[%c0_1, %c0_2] : memref<512x2048xbf16, #tpu.memory_space<vmem>>, vector<512x2048xbf16>
    %cst = arith.constant dense<0.000000e+00> : vector<2x2048xf32>
    %2 = tpu.matmul %0, %1, %cst {dimension_numbers = #tpu.dot_dimension_numbers<[1], [0], [0], [1], [0, 0, 1, 1], [], []>} : vector<2x512xbf16>, vector<512x2048xbf16>, vector<2x2048xf32> -> vector<2x2048xf32>
    %3 = arith.truncf %2 : vector<2x2048xf32> to vector<2x2048xbf16>
    %c0_3 = arith.constant 0 : index
    %c0_4 = arith.constant 0 : index
    %4 = vector.load %arg2[%c0_3, %c0_4] : memref<2x2048xbf16, #tpu.memory_space<vmem>>, vector<2x2048xbf16>
    tpu.vector_store %arg2[%c0_3, %c0_4], %3 {strides = array<i32>} : memref<2x2048xbf16, #tpu.memory_space<vmem>>, vector<2x2048xbf16>,
    return
  }
}

</mosaic_0001>

<bundles_post_ra>
// kernel: tpu_custom_call.1
= control target key start
LH: loop header
LB: loop body
LE: loop exit
PB: predicated region body
PF: predicated region fallthrough
CT: control target
= control target key end

     0   :  { %7 = vsyncpa [#allocation3], 0  ;;  %s4715_s0 = inlined_call_operand.hbm [shape: bf16[2,512], index: 0, kind: input, shape index: {}]   ;;  %s4716_s1 = inlined_call_operand.hbm [shape: bf16[512,2048], index: 1, kind: input, shape index: {}]   ;;  %s4717_s2 = inlined_call_operand.hbm [shape: bf16[2,2048], index: 2, kind: output, shape index: {}]  }
   0x1   :  { %8 = vsyncpa [#allocation6], 0 }
   0x2   :  { %9 = vsyncpa [#allocation4], 0  ;;  %s4577_s9 = smov [#allocation2]   ;;  %s4578_s11 = smov [#allocation5]  }
   0x3   :  { %s16_s10 = sshll.u32 %s4577_s9, 4  ;;  %s25_s12 = sshll.u32 %s4578_s11, 4  ;;  %s17_s10 = int_to_ptr.vmem [resolvable:$true] %s16_s10  ;;  %s4598_s12 = int_to_ptr.vmem [resolvable:$true] %s25_s12 }
   0x4   :  { %s4505_s15 = scalar_lea.hbm %s4715_s0, 64 }
   0x5   :  { %p4506_p0 = scmp.ne.s32.totalorder %s4715_s0, %s4505_s15  ;;  %p4509_p1 = scmp.lt.u32.totalorder %s4505_s15, %s4715_s0 }
   0x7   :  { %p4511_p2 = pnand %p4509_p1, %p4506_p0 }
   0x9   :  { %4514 = shalt.err (!%p4511_p2)
}
   0xa   :  { %s4515_s20 = scalar_lea.vmem %s17_s10, 64  ;;  %p4520_p4 = scmp.lt.s32.totalorder %s17_s10, %s17_s10 }
   0xb   :  { %p4516_p3 = scmp.ne.s32.totalorder %s17_s10, %s4515_s20  ;;  %p4521_p5 = scmp.lt.s32.totalorder %s4515_s20, %s4515_s20 }
   0xd   :  { %p4522_p6 = por %p4521_p5, %p4520_p4 }
   0xf   :  { %p4523_p7 = pnand %p4522_p6, %p4516_p3 }
  0x11   :  { %4526 = shalt.err (!%p4523_p7)
}
  0x12   :  { %19 = dma.hbm_to_vmem [thread:$0]  %s4715_s0, 64, %s17_s10, [#allocation3]  }
  0x13   :  { %s4527_s25 = scalar_lea.hbm %s4716_s1, 65536 }
  0x14   :  { %p4528_p8 = scmp.ne.s32.totalorder %s4716_s1, %s4527_s25  ;;  %p4531_p9 = scmp.lt.u32.totalorder %s4527_s25, %s4716_s1 }
  0x16   :  { %p4533_p10 = pnand %p4531_p9, %p4528_p8 }
  0x18   :  { %4536 = shalt.err (!%p4533_p10)
}
  0x19   :  { %s4537_s30 = scalar_lea.vmem %s4598_s12, 65536  ;;  %p4542_p12 = scmp.lt.s32.totalorder %s4598_s12, %s4598_s12 }
  0x1a   :  { %p4538_p11 = scmp.ne.s32.totalorder %s4598_s12, %s4537_s30  ;;  %p4543_p13 = scmp.lt.s32.totalorder %s4537_s30, %s4537_s30 }
  0x1c   :  { %p4544_p0 = por %p4543_p13, %p4542_p12 }
  0x1e   :  { %p4545_p1 = pnand %p4544_p0, %p4538_p11 }
  0x20   :  { %4548 = shalt.err (!%p4545_p1)
}
  0x21   :  { %s4579_s0 = smov 1024   ;;  %s4580_s3 = smov 64  }
  0x22   :  { %31 = dma.hbm_to_vmem [thread:$0]  %s4716_s1, 65536, %s4598_s12, [#allocation6], %s4579_s0, %s4579_s0, %s4580_s3  }
  0x23   :  { %4571 = dma.done.wait [#allocation3], 64  }
  0x24   :  { %4572 = vsyncadd [#allocation3], 4294967232 }
  0x25   :  { %4573 = dma.done.wait [#allocation6], 65536  }
  0x26   :  { %4574 = vsyncadd [#allocation6], 4294901760  ;;  %v39_v0 = vld [vmem:[#allocation5] sm:$0xff]  ;;  %v40_v2 = vld [vmem:[#allocation5 + $0x8] sm:$0xff]  ;;  %v4581_v35 = vmov 1966171168   ;;  %v563_v37 = vlaneseq }
  0x27   :  { %v47_v1 = vld [vmem:[#allocation5 + $0x40] sm:$0xff]  ;;  %v48_v4 = vld [vmem:[#allocation5 + $0x48] sm:$0xff]  ;;  %v561_v36 = vunpack.c.l.s4 %v4581_v35  ;;  %v4631_v59 = vld.sshfl [vmem:[#allocation2] sm:$0x33 pattern:$0x75316420] }
  0x28   :  { %v3948_v3 = vcombine.high %v39_v0, %v47_v1  ;;  %v3947_v5 = vcombine.low %v39_v0, %v47_v1  ;;  %v55_v6 = vld [vmem:[#allocation5 + $0x80] sm:$0xff]  ;;  %v3950_v8 = vcombine.high %v40_v2, %v48_v4  ;;  %v3949_v9 = vcombine.low %v40_v2, %v48_v4  ;;  %v56_v11 = vld [vmem:[#allocation5 + $0x88] sm:$0xff]  ;;  %s4582_s1 = smov [#allocation7]  }
  0x29   :  { %v63_v7 = vld [vmem:[#allocation5 + $0xc0] sm:$0xff]  ;;  %v64_v12 = vld [vmem:[#allocation5 + $0xc8] sm:$0xff]  ;;  %v562_v46 = vunpack.c.0.s8 %v561_v36  ;;  %v564_v47 = vshrl.u32 %v563_v37, 7  ;;  %v559_v63 = vcombine.high %v4631_v59, %v4631_v59  ;;  %s3936_s6 = sshll.u32 %s4582_s1, 4  ;;  %s3937_s6 = int_to_ptr.vmem [resolvable:$true] %s3936_s6 }
  0x2a   :  { %v3964_v10 = vcombine.high %v55_v6, %v63_v7  ;;  %v71_v13 = vld [vmem:[#allocation5 + $0x100] sm:$0xff]  ;;  %3140 = vmatprep.subr.bf16.mxu0 %v3948_v3  ;;  %v3966_v14 = vcombine.high %v56_v11, %v64_v12  ;;  %v72_v16 = vld [vmem:[#allocation5 + $0x108] sm:$0xff]  ;;  %3222 = vmatprep.subr.bf16.mxu1 %v3950_v8  ;;  %v3963_v18 = vcombine.low %v55_v6, %v63_v7  ;;  %s4549_s7 = scalar_lea.vmem %s3937_s6, 256  ;;  %p4554_p3 = scmp.lt.s32.totalorder %s3937_s6, %s3937_s6 }
  0x2b   :  { %v79_v15 = vld [vmem:[#allocation5 + $0x140] sm:$0xff]  ;;  %v80_v17 = vld [vmem:[#allocation5 + $0x148] sm:$0xff]  ;;  %3141 = vmatpush1.bf16.msra.mxu0 %v3947_v5  ;;  %3223 = vmatpush1.bf16.msra.mxu1 %v3949_v9  ;;  %v3965_v19 = vcombine.low %v56_v11, %v64_v12  ;;  %v4629_v56 = vsub.s32 %v562_v46, %v564_v47  ;;  %p4550_p2 = scmp.ne.s32.totalorder %s3937_s6, %s4549_s7  ;;  %p4555_p4 = scmp.lt.s32.totalorder %s4549_s7, %s4549_s7 }
  0x2c   :  { %3142 = vmatprep.subr.bf16.mxu0 %v3964_v10  ;;  %v3980_v20 = vcombine.high %v71_v13, %v79_v15  ;;  %3224 = vmatprep.subr.bf16.mxu1 %v3966_v14  ;;  %v3982_v21 = vcombine.high %v72_v16, %v80_v17  ;;  %v87_v22 = vld [vmem:[#allocation5 + $0x180] sm:$0xff]  ;;  %v88_v24 = vld [vmem:[#allocation5 + $0x188] sm:$0xff]  ;;  %v3979_v26 = vcombine.low %v71_v13, %v79_v15 }
  0x2d   :  { %v95_v23 = vld [vmem:[#allocation5 + $0x1c0] sm:$0xff]  ;;  %v96_v25 = vld [vmem:[#allocation5 + $0x1c8] sm:$0xff]  ;;  %v3981_v27 = vcombine.low %v72_v16, %v80_v17  ;;  %v4636_v3 = vrot.slane %v559_v63, %v4629_v56  ;;  %p4556_p5 = por %p4555_p4, %p4554_p3 }
  0x2e   :  { %v3996_v28 = vcombine.high %v87_v22, %v95_v23  ;;  %v3998_v29 = vcombine.high %v88_v24, %v96_v25  ;;  %v103_v30 = vld [vmem:[#allocation5 + $0x200] sm:$0xff]  ;;  %v104_v32 = vld [vmem:[#allocation5 + $0x208] sm:$0xff]  ;;  %v3995_v34 = vcombine.low %v87_v22, %v95_v23  ;;  %v3997_v38 = vcombine.low %v88_v24, %v96_v25 }
  0x2f   :  { %3143 = vmatpush1.bf16.msra.mxu0 %v3963_v18  ;;  %3225 = vmatpush1.bf16.msra.mxu1 %v3965_v19  ;;  %v111_v31 = vld [vmem:[#allocation5 + $0x240] sm:$0xff]  ;;  %v112_v33 = vld [vmem:[#allocation5 + $0x248] sm:$0xff]  ;;  %p4557_p6 = pnand %p4556_p5, %p4550_p2 }
  0x30   :  { %3144 = vmatprep.subr.bf16.mxu0 %v3980_v20  ;;  %3226 = vmatprep.subr.bf16.mxu1 %v3982_v21  ;;  %v4012_v39 = vcombine.high %v103_v30, %v111_v31  ;;  %v4014_v40 = vcombine.high %v104_v32, %v112_v33  ;;  %v119_v41 = vld [vmem:[#allocation5 + $0x280] sm:$0xff]  ;;  %v120_v43 = vld [vmem:[#allocation5 + $0x288] sm:$0xff]  ;;  %v4011_v45 = vcombine.low %v103_v30, %v111_v31 }
  0x31   :  { %v127_v42 = vld [vmem:[#allocation5 + $0x2c0] sm:$0xff]  ;;  %v128_v44 = vld [vmem:[#allocation5 + $0x2c8] sm:$0xff]  ;;  %v4013_v48 = vcombine.low %v104_v32, %v112_v33  ;;  %3172 = vmatprep.mubr.bf16.mxu0 %v4636_v3  ;;  %3254 = vmatprep.mubr.bf16.mxu1 %v4636_v3 }
  0x32   :  { %v4028_v49 = vcombine.high %v119_v41, %v127_v42  ;;  %v4030_v50 = vcombine.high %v120_v43, %v128_v44  ;;  %v135_v51 = vld [vmem:[#allocation5 + $0x300] sm:$0xff]  ;;  %v136_v53 = vld [vmem:[#allocation5 + $0x308] sm:$0xff]  ;;  %v4027_v55 = vcombine.low %v119_v41, %v127_v42  ;;  %v4029_v57 = vcombine.low %v120_v43, %v128_v44 }
  0x33   :  { %3145 = vmatpush1.bf16.msra.mxu0 %v3979_v26  ;;  %3227 = vmatpush1.bf16.msra.mxu1 %v3981_v27  ;;  %v143_v52 = vld [vmem:[#allocation5 + $0x340] sm:$0xff]  ;;  %v144_v54 = vld [vmem:[#allocation5 + $0x348] sm:$0xff] }
  0x34   :  { %3146 = vmatprep.subr.bf16.mxu0 %v3996_v28  ;;  %3228 = vmatprep.subr.bf16.mxu1 %v3998_v29  ;;  %v4044_v58 = vcombine.high %v135_v51, %v143_v52  ;;  %v4046_v60 = vcombine.high %v136_v53, %v144_v54  ;;  %v151_v61 = vld [vmem:[#allocation5 + $0x380] sm:$0xff]  ;;  %v152_v0 = vld [vmem:[#allocation5 + $0x388] sm:$0xff]  ;;  %v4043_v2 = vcombine.low %v135_v51, %v143_v52 }
  0x35   :  { %v159_v62 = vld [vmem:[#allocation5 + $0x3c0] sm:$0xff]  ;;  %v160_v1 = vld [vmem:[#allocation5 + $0x3c8] sm:$0xff]  ;;  %v4045_v4 = vcombine.low %v136_v53, %v144_v54 }
  0x36   :  { %v4060_v5 = vcombine.high %v151_v61, %v159_v62  ;;  %v4062_v6 = vcombine.high %v152_v0, %v160_v1  ;;  %v167_v7 = vld [vmem:[#allocation5 + $0x400] sm:$0xff]  ;;  %v168_v9 = vld [vmem:[#allocation5 + $0x408] sm:$0xff]  ;;  %v4059_v11 = vcombine.low %v151_v61, %v159_v62  ;;  %v4061_v12 = vcombine.low %v152_v0, %v160_v1 }
  0x37   :  { %3147 = vmatpush1.bf16.msra.mxu0 %v3995_v34  ;;  %3229 = vmatpush1.bf16.msra.mxu1 %v3997_v38  ;;  %v175_v8 = vld [vmem:[#allocation5 + $0x440] sm:$0xff]  ;;  %v176_v10 = vld [vmem:[#allocation5 + $0x448] sm:$0xff] }
  0x38   :  { %3148 = vmatprep.subr.bf16.mxu0 %v4012_v39  ;;  %3230 = vmatprep.subr.bf16.mxu1 %v4014_v40  ;;  %v4076_v13 = vcombine.high %v167_v7, %v175_v8  ;;  %v4078_v14 = vcombine.high %v168_v9, %v176_v10  ;;  %v183_v15 = vld [vmem:[#allocation5 + $0x480] sm:$0xff]  ;;  %v184_v17 = vld [vmem:[#allocation5 + $0x488] sm:$0xff]  ;;  %v4075_v19 = vcombine.low %v167_v7, %v175_v8 }
  0x39   :  { %v191_v16 = vld [vmem:[#allocation5 + $0x4c0] sm:$0xff]  ;;  %v192_v18 = vld [vmem:[#allocation5 + $0x4c8] sm:$0xff]  ;;  %v4077_v20 = vcombine.low %v168_v9, %v176_v10 }
  0x3a   :  { %v4092_v21 = vcombine.high %v183_v15, %v191_v16  ;;  %v4094_v22 = vcombine.high %v184_v17, %v192_v18  ;;  %v199_v23 = vld [vmem:[#allocation5 + $0x500] sm:$0xff]  ;;  %v200_v25 = vld [vmem:[#allocation5 + $0x508] sm:$0xff]  ;;  %v4091_v27 = vcombine.low %v183_v15, %v191_v16  ;;  %v4093_v28 = vcombine.low %v184_v17, %v192_v18 }
  0x3b   :  { %3149 = vmatpush1.bf16.msra.mxu0 %v4011_v45  ;;  %3231 = vmatpush1.bf16.msra.mxu1 %v4013_v48  ;;  %v207_v24 = vld [vmem:[#allocation5 + $0x540] sm:$0xff]  ;;  %v208_v26 = vld [vmem:[#allocation5 + $0x548] sm:$0xff] }
  0x3c   :  { %3150 = vmatprep.subr.bf16.mxu0 %v4028_v49  ;;  %3232 = vmatprep.subr.bf16.mxu1 %v4030_v50  ;;  %v4108_v29 = vcombine.high %v199_v23, %v207_v24  ;;  %v4110_v30 = vcombine.high %v200_v25, %v208_v26  ;;  %v215_v31 = vld [vmem:[#allocation5 + $0x580] sm:$0xff]  ;;  %v216_v33 = vld [vmem:[#allocation5 + $0x588] sm:$0xff]  ;;  %v4107_v35 = vcombine.low %v199_v23, %v207_v24 }
  0x3d   :  { %v223_v32 = vld [vmem:[#allocation5 + $0x5c0] sm:$0xff]  ;;  %v224_v34 = vld [vmem:[#allocation5 + $0x5c8] sm:$0xff]  ;;  %v4109_v36 = vcombine.low %v200_v25, %v208_v26 }
  0x3e   :  { %v4124_v37 = vcombine.high %v215_v31, %v223_v32  ;;  %v4126_v38 = vcombine.high %v216_v33, %v224_v34  ;;  %v231_v39 = vld [vmem:[#allocation5 + $0x600] sm:$0xff]  ;;  %v232_v41 = vld [vmem:[#allocation5 + $0x608] sm:$0xff]  ;;  %v4123_v43 = vcombine.low %v215_v31, %v223_v32  ;;  %v4125_v44 = vcombine.low %v216_v33, %v224_v34 }
  0x3f   :  { %3151 = vmatpush1.bf16.msra.mxu0 %v4027_v55  ;;  %3233 = vmatpush1.bf16.msra.mxu1 %v4029_v57  ;;  %v239_v40 = vld [vmem:[#allocation5 + $0x640] sm:$0xff]  ;;  %v240_v42 = vld [vmem:[#allocation5 + $0x648] sm:$0xff] }
  0x40   :  { %3152 = vmatprep.subr.bf16.mxu0 %v4044_v58  ;;  %3234 = vmatprep.subr.bf16.mxu1 %v4046_v60  ;;  %v4140_v45 = vcombine.high %v231_v39, %v239_v40  ;;  %v4142_v46 = vcombine.high %v232_v41, %v240_v42  ;;  %v247_v47 = vld [vmem:[#allocation5 + $0x680] sm:$0xff]  ;;  %v248_v49 = vld [vmem:[#allocation5 + $0x688] sm:$0xff]  ;;  %v4139_v51 = vcombine.low %v231_v39, %v239_v40 }
  0x41   :  { %v255_v48 = vld [vmem:[#allocation5 + $0x6c0] sm:$0xff]  ;;  %v256_v50 = vld [vmem:[#allocation5 + $0x6c8] sm:$0xff]  ;;  %v4141_v52 = vcombine.low %v232_v41, %v240_v42 }
  0x42   :  { %v4156_v53 = vcombine.high %v247_v47, %v255_v48  ;;  %v4158_v54 = vcombine.high %v248_v49, %v256_v50  ;;  %v263_v55 = vld [vmem:[#allocation5 + $0x700] sm:$0xff]  ;;  %v264_v58 = vld [vmem:[#allocation5 + $0x708] sm:$0xff]  ;;  %v4155_v61 = vcombine.low %v247_v47, %v255_v48  ;;  %v4157_v62 = vcombine.low %v248_v49, %v256_v50 }
  0x43   :  { %3153 = vmatpush1.bf16.msra.mxu0 %v4043_v2  ;;  %3235 = vmatpush1.bf16.msra.mxu1 %v4045_v4  ;;  %v271_v57 = vld [vmem:[#allocation5 + $0x740] sm:$0xff]  ;;  %v272_v60 = vld [vmem:[#allocation5 + $0x748] sm:$0xff] }
  0x44   :  { %3154 = vmatprep.subr.bf16.mxu0 %v4060_v5  ;;  %3236 = vmatprep.subr.bf16.mxu1 %v4062_v6  ;;  %v4172_v63 = vcombine.high %v263_v55, %v271_v57  ;;  %v4174_v0 = vcombine.high %v264_v58, %v272_v60  ;;  %v279_v1 = vld [vmem:[#allocation5 + $0x780] sm:$0xff]  ;;  %v280_v4 = vld [vmem:[#allocation5 + $0x788] sm:$0xff]  ;;  %v4171_v6 = vcombine.low %v263_v55, %v271_v57 }
  0x45   :  { %v287_v2 = vld [vmem:[#allocation5 + $0x7c0] sm:$0xff]  ;;  %v288_v5 = vld [vmem:[#allocation5 + $0x7c8] sm:$0xff]  ;;  %v4173_v7 = vcombine.low %v264_v58, %v272_v60 }
  0x46   :  { %v4188_v8 = vcombine.high %v279_v1, %v287_v2  ;;  %v4190_v9 = vcombine.high %v280_v4, %v288_v5  ;;  %v295_v10 = vld [vmem:[#allocation5 + $0x800] sm:$0xff]  ;;  %v4189_v15 = vcombine.low %v280_v4, %v288_v5 }
  0x47   :  { %3155 = vmatpush1.bf16.msra.mxu0 %v4059_v11  ;;  %3237 = vmatpush1.bf16.msra.mxu1 %v4061_v12  ;;  %v303_v11 = vld [vmem:[#allocation5 + $0x840] sm:$0xff]  ;;  %v296_v12 = vld [vmem:[#allocation5 + $0x808] sm:$0xff] }
  0x48   :  { %3156 = vmatprep.subr.bf16.mxu0 %v4076_v13  ;;  %3238 = vmatprep.subr.bf16.mxu1 %v4078_v14  ;;  %v304_v13 = vld [vmem:[#allocation5 + $0x848] sm:$0xff]  ;;  %v4187_v14 = vcombine.low %v279_v1, %v287_v2  ;;  %v4204_v16 = vcombine.high %v295_v10, %v303_v11  ;;  %v311_v18 = vld [vmem:[#allocation5 + $0x880] sm:$0xff]  ;;  %v4203_v23 = vcombine.low %v295_v10, %v303_v11 }
  0x49   :  { %v4206_v17 = vcombine.high %v296_v12, %v304_v13  ;;  %v4205_v24 = vcombine.low %v296_v12, %v304_v13 }
  0x4b   :  { %3157 = vmatpush1.bf16.msra.mxu0 %v4075_v19  ;;  %3239 = vmatpush1.bf16.msra.mxu1 %v4077_v20  ;;  %v319_v19 = vld [vmem:[#allocation5 + $0x8c0] sm:$0xff]  ;;  %v4642_v20 = vrot.slane %v4631_v59, %v4629_v56  ;;  %v328_v59 = vld [vmem:[#allocation5 + $0x908] sm:$0xff] }
  0x4c   :  { %3158 = vmatprep.subr.bf16.mxu0 %v4092_v21  ;;  %3240 = vmatprep.subr.bf16.mxu1 %v4094_v22  ;;  %v312_v21 = vld [vmem:[#allocation5 + $0x888] sm:$0xff]  ;;  %v4220_v25 = vcombine.high %v311_v18, %v319_v19  ;;  %v4219_v31 = vcombine.low %v311_v18, %v319_v19 }
  0x4d   :  { %v320_v22 = vld [vmem:[#allocation5 + $0x8c8] sm:$0xff] }
  0x4e   :  { %v4222_v26 = vcombine.high %v312_v21, %v320_v22  ;;  %v4221_v32 = vcombine.low %v312_v21, %v320_v22 }
  0x4f   :  { %3159 = vmatpush1.bf16.msra.mxu0 %v4091_v27  ;;  %3241 = vmatpush1.bf16.msra.mxu1 %v4093_v28  ;;  %v327_v27 = vld [vmem:[#allocation5 + $0x900] sm:$0xff] }
  0x50   :  { %3160 = vmatprep.subr.bf16.mxu0 %v4108_v29  ;;  %3242 = vmatprep.subr.bf16.mxu1 %v4110_v30  ;;  %v335_v28 = vld [vmem:[#allocation5 + $0x940] sm:$0xff]  ;;  %v4646_v29 = vcombine.high %v4636_v3, %v4636_v3  ;;  %v336_v30 = vld [vmem:[#allocation5 + $0x948] sm:$0xff] }
  0x51   :  { %v4236_v33 = vcombine.high %v327_v27, %v335_v28  ;;  %v4238_v34 = vcombine.high %v328_v59, %v336_v30  ;;  %v4235_v39 = vcombine.low %v327_v27, %v335_v28  ;;  %v4237_v40 = vcombine.low %v328_v59, %v336_v30 }
  0x53   :  { %3161 = vmatpush1.bf16.msra.mxu0 %v4107_v35  ;;  %3243 = vmatpush1.bf16.msra.mxu1 %v4109_v36  ;;  %v343_v35 = vld [vmem:[#allocation5 + $0x980] sm:$0xff] }
  0x54   :  { %3162 = vmatprep.subr.bf16.mxu0 %v4124_v37  ;;  %3244 = vmatprep.subr.bf16.mxu1 %v4126_v38  ;;  %v351_v36 = vld [vmem:[#allocation5 + $0x9c0] sm:$0xff]  ;;  %v344_v37 = vld [vmem:[#allocation5 + $0x988] sm:$0xff] }
  0x55   :  { %v352_v38 = vld [vmem:[#allocation5 + $0x9c8] sm:$0xff]  ;;  %v4252_v41 = vcombine.high %v343_v35, %v351_v36  ;;  %v4251_v47 = vcombine.low %v343_v35, %v351_v36 }
  0x56   :  { %v4254_v42 = vcombine.high %v344_v37, %v352_v38  ;;  %v4253_v48 = vcombine.low %v344_v37, %v352_v38 }
  0x57   :  { %3163 = vmatpush1.bf16.msra.mxu0 %v4123_v43  ;;  %3245 = vmatpush1.bf16.msra.mxu1 %v4125_v44  ;;  %v359_v43 = vld [vmem:[#allocation5 + $0xa00] sm:$0xff] }
  0x58   :  { %3164 = vmatprep.subr.bf16.mxu0 %v4140_v45  ;;  %3246 = vmatprep.subr.bf16.mxu1 %v4142_v46  ;;  %v367_v44 = vld [vmem:[#allocation5 + $0xa40] sm:$0xff]  ;;  %v360_v45 = vld [vmem:[#allocation5 + $0xa08] sm:$0xff] }
  0x59   :  { %v368_v46 = vld [vmem:[#allocation5 + $0xa48] sm:$0xff]  ;;  %v4268_v49 = vcombine.high %v359_v43, %v367_v44  ;;  %v4267_v55 = vcombine.low %v359_v43, %v367_v44 }
  0x5a   :  { %v4270_v50 = vcombine.high %v360_v45, %v368_v46  ;;  %v4269_v57 = vcombine.low %v360_v45, %v368_v46 }
  0x5b   :  { %3165 = vmatpush1.bf16.msra.mxu0 %v4139_v51  ;;  %3247 = vmatpush1.bf16.msra.mxu1 %v4141_v52  ;;  %v375_v51 = vld [vmem:[#allocation5 + $0xa80] sm:$0xff] }
  0x5c   :  { %3166 = vmatprep.subr.bf16.mxu0 %v4156_v53  ;;  %3248 = vmatprep.subr.bf16.mxu1 %v4158_v54  ;;  %v383_v52 = vld [vmem:[#allocation5 + $0xac0] sm:$0xff]  ;;  %v376_v53 = vld [vmem:[#allocation5 + $0xa88] sm:$0xff] }
  0x5d   :  { %v384_v54 = vld [vmem:[#allocation5 + $0xac8] sm:$0xff]  ;;  %v4284_v58 = vcombine.high %v375_v51, %v383_v52  ;;  %v4283_v1 = vcombine.low %v375_v51, %v383_v52 }
  0x5e   :  { %v4286_v60 = vcombine.high %v376_v53, %v384_v54  ;;  %v4285_v2 = vcombine.low %v376_v53, %v384_v54 }
  0x5f   :  { %3167 = vmatpush1.bf16.msra.mxu0 %v4155_v61  ;;  %3249 = vmatpush1.bf16.msra.mxu1 %v4157_v62  ;;  %v391_v61 = vld [vmem:[#allocation5 + $0xb00] sm:$0xff] }
  0x60   :  { %3168 = vmatprep.subr.bf16.mxu0 %v4172_v63  ;;  %3250 = vmatprep.subr.bf16.mxu1 %v4174_v0  ;;  %v399_v62 = vld [vmem:[#allocation5 + $0xb40] sm:$0xff]  ;;  %v392_v63 = vld [vmem:[#allocation5 + $0xb08] sm:$0xff] }
  0x61   :  { %v400_v0 = vld [vmem:[#allocation5 + $0xb48] sm:$0xff]  ;;  %v4300_v4 = vcombine.high %v391_v61, %v399_v62  ;;  %v4299_v10 = vcombine.low %v391_v61, %v399_v62 }
  0x62   :  { %v4302_v5 = vcombine.high %v392_v63, %v400_v0  ;;  %v4301_v11 = vcombine.low %v392_v63, %v400_v0 }
  0x63   :  { %3169 = vmatpush1.bf16.msra.mxu0 %v4171_v6  ;;  %3251 = vmatpush1.bf16.msra.mxu1 %v4173_v7  ;;  %v407_v6 = vld [vmem:[#allocation5 + $0xb80] sm:$0xff] }
  0x64   :  { %3170 = vmatprep.subr.bf16.mxu0 %v4188_v8  ;;  %3252 = vmatprep.subr.bf16.mxu1 %v4190_v9  ;;  %v415_v7 = vld [vmem:[#allocation5 + $0xbc0] sm:$0xff]  ;;  %v408_v8 = vld [vmem:[#allocation5 + $0xb88] sm:$0xff] }
  0x65   :  { %v416_v9 = vld [vmem:[#allocation5 + $0xbc8] sm:$0xff]  ;;  %v4316_v12 = vcombine.high %v407_v6, %v415_v7  ;;  %v4315_v18 = vcombine.low %v407_v6, %v415_v7 }
  0x66   :  { %v4318_v13 = vcombine.high %v408_v8, %v416_v9  ;;  %v4317_v19 = vcombine.low %v408_v8, %v416_v9 }
  0x67   :  { %3171 = vmatpush1.bf16.msra.mxu0 %v4187_v14  ;;  %3253 = vmatpush1.bf16.msra.mxu1 %v4189_v15  ;;  %v423_v14 = vld [vmem:[#allocation5 + $0xc00] sm:$0xff] }
  0x68   :  { %3181 = vmatprep.subr.bf16.mxu0 %v4204_v16  ;;  %3263 = vmatprep.subr.bf16.mxu1 %v4206_v17  ;;  %v431_v15 = vld [vmem:[#allocation5 + $0xc40] sm:$0xff]  ;;  %v424_v16 = vld [vmem:[#allocation5 + $0xc08] sm:$0xff] }
  0x69   :  { %v432_v17 = vld [vmem:[#allocation5 + $0xc48] sm:$0xff]  ;;  %v4332_v21 = vcombine.high %v423_v14, %v431_v15  ;;  %v4331_v27 = vcombine.low %v423_v14, %v431_v15 }
  0x6a   :  { %3173 = vmatmul.mubr.bf16.vlgmr.msra.gmra.mrb[0].mxu0 %v4642_v20  ;;  %3255 = vmatmul.mubr.bf16.vlgmr.msra.gmra.mrb[0].mxu1 %v4642_v20  ;;  %v4334_v22 = vcombine.high %v424_v16, %v432_v17  ;;  %v4333_v28 = vcombine.low %v424_v16, %v432_v17 }
  0x6b   :  { %3182 = vmatpush1.bf16.msra.mxu0 %v4203_v23  ;;  %3264 = vmatpush1.bf16.msra.mxu1 %v4205_v24  ;;  %v439_v23 = vld [vmem:[#allocation5 + $0xc80] sm:$0xff] }
  0x6c   :  { %3183 = vmatprep.subr.bf16.mxu0 %v4220_v25  ;;  %3265 = vmatprep.subr.bf16.mxu1 %v4222_v26  ;;  %v447_v24 = vld [vmem:[#allocation5 + $0xcc0] sm:$0xff]  ;;  %v440_v25 = vld [vmem:[#allocation5 + $0xc88] sm:$0xff] }
  0x6d   :  { %3213 = vmatprep.mubr.bf16.mxu0 %v4646_v29  ;;  %3295 = vmatprep.mubr.bf16.mxu1 %v4646_v29  ;;  %v448_v26 = vld [vmem:[#allocation5 + $0xcc8] sm:$0xff]  ;;  %v4348_v59 = vcombine.high %v439_v23, %v447_v24  ;;  %v4347_v35 = vcombine.low %v439_v23, %v447_v24 }
  0x6e   :  { %v4350_v30 = vcombine.high %v440_v25, %v448_v26  ;;  %v4349_v36 = vcombine.low %v440_v25, %v448_v26 }
  0x6f   :  { %3184 = vmatpush1.bf16.msra.mxu0 %v4219_v31  ;;  %3266 = vmatpush1.bf16.msra.mxu1 %v4221_v32  ;;  %v455_v31 = vld [vmem:[#allocation5 + $0xd00] sm:$0xff] }
  0x70   :  { %3185 = vmatprep.subr.bf16.mxu0 %v4236_v33  ;;  %3267 = vmatprep.subr.bf16.mxu1 %v4238_v34  ;;  %v463_v32 = vld [vmem:[#allocation5 + $0xd40] sm:$0xff]  ;;  %v456_v33 = vld [vmem:[#allocation5 + $0xd08] sm:$0xff] }
  0x71   :  { %v464_v34 = vld [vmem:[#allocation5 + $0xd48] sm:$0xff]  ;;  %v4364_v37 = vcombine.high %v455_v31, %v463_v32  ;;  %v4363_v43 = vcombine.low %v455_v31, %v463_v32  ;;  %v66_v31 = vld [vmem:[#allocation5 + $0xd8] sm:$0xff] }
  0x72   :  { %v4366_v38 = vcombine.high %v456_v33, %v464_v34  ;;  %v4365_v44 = vcombine.low %v456_v33, %v464_v34 }
  0x73   :  { %3186 = vmatpush1.bf16.msra.mxu0 %v4235_v39  ;;  %3268 = vmatpush1.bf16.msra.mxu1 %v4237_v40  ;;  %v471_v39 = vld [vmem:[#allocation5 + $0xd80] sm:$0xff] }
  0x74   :  { %3187 = vmatprep.subr.bf16.mxu0 %v4252_v41  ;;  %3269 = vmatprep.subr.bf16.mxu1 %v4254_v42  ;;  %v479_v40 = vld [vmem:[#allocation5 + $0xdc0] sm:$0xff]  ;;  %v472_v41 = vld [vmem:[#allocation5 + $0xd88] sm:$0xff] }
  0x75   :  { %v480_v42 = vld [vmem:[#allocation5 + $0xdc8] sm:$0xff]  ;;  %v4380_v45 = vcombine.high %v471_v39, %v479_v40  ;;  %v4379_v51 = vcombine.low %v471_v39, %v479_v40  ;;  %v82_v39 = vld [vmem:[#allocation5 + $0x158] sm:$0xff] }
  0x76   :  { %v4382_v46 = vcombine.high %v472_v41, %v480_v42  ;;  %v4381_v52 = vcombine.low %v472_v41, %v480_v42 }
  0x77   :  { %3188 = vmatpush1.bf16.msra.mxu0 %v4251_v47  ;;  %3270 = vmatpush1.bf16.msra.mxu1 %v4253_v48  ;;  %v487_v47 = vld [vmem:[#allocation5 + $0xe00] sm:$0xff] }
  0x78   :  { %3189 = vmatprep.subr.bf16.mxu0 %v4268_v49  ;;  %3271 = vmatprep.subr.bf16.mxu1 %v4270_v50  ;;  %v495_v48 = vld [vmem:[#allocation5 + $0xe40] sm:$0xff]  ;;  %v488_v49 = vld [vmem:[#allocation5 + $0xe08] sm:$0xff] }
  0x79   :  { %v496_v50 = vld [vmem:[#allocation5 + $0xe48] sm:$0xff]  ;;  %v4396_v53 = vcombine.high %v487_v47, %v495_v48  ;;  %v4395_v61 = vcombine.low %v487_v47, %v495_v48  ;;  %v98_v47 = vld [vmem:[#allocation5 + $0x1d8] sm:$0xff] }
  0x7a   :  { %v4398_v54 = vcombine.high %v488_v49, %v496_v50  ;;  %v4397_v62 = vcombine.low %v488_v49, %v496_v50 }
  0x7b   :  { %3190 = vmatpush1.bf16.msra.mxu0 %v4267_v55  ;;  %3272 = vmatpush1.bf16.msra.mxu1 %v4269_v57  ;;  %v503_v55 = vld [vmem:[#allocation5 + $0xe80] sm:$0xff] }
  0x7c   :  { %3191 = vmatprep.subr.bf16.mxu0 %v4284_v58  ;;  %3273 = vmatprep.subr.bf16.mxu1 %v4286_v60  ;;  %v511_v57 = vld [vmem:[#allocation5 + $0xec0] sm:$0xff]  ;;  %v504_v58 = vld [vmem:[#allocation5 + $0xe88] sm:$0xff] }
  0x7d   :  { %v512_v60 = vld [vmem:[#allocation5 + $0xec8] sm:$0xff]  ;;  %v4412_v63 = vcombine.high %v503_v55, %v511_v57  ;;  %v4411_v6 = vcombine.low %v503_v55, %v511_v57  ;;  %v114_v55 = vld [vmem:[#allocation5 + $0x258] sm:$0xff] }
  0x7e   :  { %v4414_v0 = vcombine.high %v504_v58, %v512_v60  ;;  %v4413_v7 = vcombine.low %v504_v58, %v512_v60 }
  0x7f   :  { %3192 = vmatpush1.bf16.msra.mxu0 %v4283_v1  ;;  %3274 = vmatpush1.bf16.msra.mxu1 %v4285_v2  ;;  %v519_v1 = vld [vmem:[#allocation5 + $0xf00] sm:$0xff] }
  0x80   :  { %3193 = vmatprep.subr.bf16.mxu0 %v4300_v4  ;;  %3275 = vmatprep.subr.bf16.mxu1 %v4302_v5  ;;  %v527_v2 = vld [vmem:[#allocation5 + $0xf40] sm:$0xff]  ;;  %v520_v4 = vld [vmem:[#allocation5 + $0xf08] sm:$0xff] }
  0x81   :  { %v528_v5 = vld [vmem:[#allocation5 + $0xf48] sm:$0xff]  ;;  %v4428_v8 = vcombine.high %v519_v1, %v527_v2  ;;  %v4427_v14 = vcombine.low %v519_v1, %v527_v2  ;;  %v130_v1 = vld [vmem:[#allocation5 + $0x2d8] sm:$0xff] }
  0x82   :  { %v4430_v9 = vcombine.high %v520_v4, %v528_v5  ;;  %v4429_v15 = vcombine.low %v520_v4, %v528_v5 }
  0x83   :  { %3194 = vmatpush1.bf16.msra.mxu0 %v4299_v10  ;;  %3276 = vmatpush1.bf16.msra.mxu1 %v4301_v11  ;;  %v535_v10 = vld [vmem:[#allocation5 + $0xf80] sm:$0xff] }
  0x84   :  { %3195 = vmatprep.subr.bf16.mxu0 %v4316_v12  ;;  %3277 = vmatprep.subr.bf16.mxu1 %v4318_v13  ;;  %v543_v11 = vld [vmem:[#allocation5 + $0xfc0] sm:$0xff]  ;;  %v536_v12 = vld [vmem:[#allocation5 + $0xf88] sm:$0xff] }
  0x85   :  { %v544_v13 = vld [vmem:[#allocation5 + $0xfc8] sm:$0xff]  ;;  %v4444_v16 = vcombine.high %v535_v10, %v543_v11  ;;  %v4443_v23 = vcombine.low %v535_v10, %v543_v11  ;;  %v146_v10 = vld [vmem:[#allocation5 + $0x358] sm:$0xff] }
  0x86   :  { %v4446_v17 = vcombine.high %v536_v12, %v544_v13  ;;  %v4445_v24 = vcombine.low %v536_v12, %v544_v13 }
  0x87   :  { %3196 = vmatpush1.bf16.msra.mxu0 %v4315_v18  ;;  %3278 = vmatpush1.bf16.msra.mxu1 %v4317_v19  ;;  %v41_v18 = vld [vmem:[#allocation5 + $0x10] sm:$0xff] }
  0x88   :  { %3197 = vmatprep.subr.bf16.mxu0 %v4332_v21  ;;  %3279 = vmatprep.subr.bf16.mxu1 %v4334_v22  ;;  %v49_v19 = vld [vmem:[#allocation5 + $0x50] sm:$0xff]  ;;  %v42_v21 = vld [vmem:[#allocation5 + $0x18] sm:$0xff] }
  0x89   :  { %v50_v22 = vld [vmem:[#allocation5 + $0x58] sm:$0xff]  ;;  %v3952_v25 = vcombine.high %v41_v18, %v49_v19  ;;  %v3951_v32 = vcombine.low %v41_v18, %v49_v19 }
  0x8a   :  { %v3954_v26 = vcombine.high %v42_v21, %v50_v22  ;;  %v3953_v33 = vcombine.low %v42_v21, %v50_v22  ;;  %v162_v18 = vld [vmem:[#allocation5 + $0x3d8] sm:$0xff] }
  0x8b   :  { %3198 = vmatpush1.bf16.msra.mxu0 %v4331_v27  ;;  %3280 = vmatpush1.bf16.msra.mxu1 %v4333_v28  ;;  %v57_v27 = vld [vmem:[#allocation5 + $0x90] sm:$0xff] }
  0x8c   :  { %3199 = vmatprep.subr.bf16.mxu0 %v4348_v59  ;;  %3281 = vmatprep.subr.bf16.mxu1 %v4350_v30  ;;  %v65_v28 = vld [vmem:[#allocation5 + $0xd0] sm:$0xff]  ;;  %v4654_v59 = vcombine.high %v4642_v20, %v4642_v20  ;;  %v58_v30 = vld [vmem:[#allocation5 + $0x98] sm:$0xff] }
  0x8d   :  { %v3968_v34 = vcombine.high %v57_v27, %v65_v28  ;;  %v3967_v40 = vcombine.low %v57_v27, %v65_v28  ;;  %v3969_v41 = vcombine.low %v58_v30, %v66_v31  ;;  %v178_v27 = vld [vmem:[#allocation5 + $0x458] sm:$0xff] }
  0x8f   :  { %3200 = vmatpush1.bf16.msra.mxu0 %v4347_v35  ;;  %3282 = vmatpush1.bf16.msra.mxu1 %v4349_v36  ;;  %v3970_v35 = vcombine.high %v58_v30, %v66_v31  ;;  %v73_v36 = vld [vmem:[#allocation5 + $0x110] sm:$0xff] }
  0x90   :  { %3201 = vmatprep.subr.bf16.mxu0 %v4364_v37  ;;  %3283 = vmatprep.subr.bf16.mxu1 %v4366_v38  ;;  %v81_v37 = vld [vmem:[#allocation5 + $0x150] sm:$0xff]  ;;  %v74_v38 = vld [vmem:[#allocation5 + $0x118] sm:$0xff] }
  0x91   :  { %v3984_v42 = vcombine.high %v73_v36, %v81_v37  ;;  %v3983_v48 = vcombine.low %v73_v36, %v81_v37  ;;  %v3985_v49 = vcombine.low %v74_v38, %v82_v39  ;;  %v194_v36 = vld [vmem:[#allocation5 + $0x4d8] sm:$0xff] }
  0x93   :  { %3202 = vmatpush1.bf16.msra.mxu0 %v4363_v43  ;;  %3284 = vmatpush1.bf16.msra.mxu1 %v4365_v44  ;;  %v3986_v43 = vcombine.high %v74_v38, %v82_v39  ;;  %v89_v44 = vld [vmem:[#allocation5 + $0x190] sm:$0xff] }
  0x94   :  { %3203 = vmatprep.subr.bf16.mxu0 %v4380_v45  ;;  %3285 = vmatprep.subr.bf16.mxu1 %v4382_v46  ;;  %v97_v45 = vld [vmem:[#allocation5 + $0x1d0] sm:$0xff]  ;;  %v90_v46 = vld [vmem:[#allocation5 + $0x198] sm:$0xff] }
  0x95   :  { %v4000_v50 = vcombine.high %v89_v44, %v97_v45  ;;  %v3999_v57 = vcombine.low %v89_v44, %v97_v45  ;;  %v4001_v58 = vcombine.low %v90_v46, %v98_v47  ;;  %v210_v44 = vld [vmem:[#allocation5 + $0x558] sm:$0xff] }
  0x97   :  { %3204 = vmatpush1.bf16.msra.mxu0 %v4379_v51  ;;  %3286 = vmatpush1.bf16.msra.mxu1 %v4381_v52  ;;  %v4002_v51 = vcombine.high %v90_v46, %v98_v47  ;;  %v105_v52 = vld [vmem:[#allocation5 + $0x210] sm:$0xff] }
  0x98   :  { %3205 = vmatprep.subr.bf16.mxu0 %v4396_v53  ;;  %3287 = vmatprep.subr.bf16.mxu1 %v4398_v54  ;;  %v113_v53 = vld [vmem:[#allocation5 + $0x250] sm:$0xff]  ;;  %v106_v54 = vld [vmem:[#allocation5 + $0x218] sm:$0xff] }
  0x99   :  { %v4016_v60 = vcombine.high %v105_v52, %v113_v53  ;;  %v4015_v2 = vcombine.low %v105_v52, %v113_v53  ;;  %v4017_v4 = vcombine.low %v106_v54, %v114_v55  ;;  %v226_v52 = vld [vmem:[#allocation5 + $0x5d8] sm:$0xff] }
  0x9b   :  { %3206 = vmatpush1.bf16.msra.mxu0 %v4395_v61  ;;  %3288 = vmatpush1.bf16.msra.mxu1 %v4397_v62  ;;  %v4018_v61 = vcombine.high %v106_v54, %v114_v55  ;;  %v121_v62 = vld [vmem:[#allocation5 + $0x290] sm:$0xff] }
  0x9c   :  { %3207 = vmatprep.subr.bf16.mxu0 %v4412_v63  ;;  %3289 = vmatprep.subr.bf16.mxu1 %v4414_v0  ;;  %v129_v63 = vld [vmem:[#allocation5 + $0x2d0] sm:$0xff]  ;;  %v122_v0 = vld [vmem:[#allocation5 + $0x298] sm:$0xff] }
  0x9d   :  { %v4032_v5 = vcombine.high %v121_v62, %v129_v63  ;;  %v4031_v11 = vcombine.low %v121_v62, %v129_v63  ;;  %v4033_v12 = vcombine.low %v122_v0, %v130_v1  ;;  %v242_v62 = vld [vmem:[#allocation5 + $0x658] sm:$0xff] }
  0x9f   :  { %3208 = vmatpush1.bf16.msra.mxu0 %v4411_v6  ;;  %3290 = vmatpush1.bf16.msra.mxu1 %v4413_v7  ;;  %v4034_v6 = vcombine.high %v122_v0, %v130_v1  ;;  %v137_v7 = vld [vmem:[#allocation5 + $0x310] sm:$0xff] }
  0xa0   :  { %3209 = vmatprep.subr.bf16.mxu0 %v4428_v8  ;;  %3291 = vmatprep.subr.bf16.mxu1 %v4430_v9  ;;  %v145_v8 = vld [vmem:[#allocation5 + $0x350] sm:$0xff]  ;;  %v138_v9 = vld [vmem:[#allocation5 + $0x318] sm:$0xff] }
  0xa1   :  { %v4048_v13 = vcombine.high %v137_v7, %v145_v8  ;;  %v4047_v19 = vcombine.low %v137_v7, %v145_v8  ;;  %v4049_v21 = vcombine.low %v138_v9, %v146_v10  ;;  %v258_v7 = vld [vmem:[#allocation5 + $0x6d8] sm:$0xff] }
  0xa3   :  { %3210 = vmatpush1.bf16.msra.mxu0 %v4427_v14  ;;  %3292 = vmatpush1.bf16.msra.mxu1 %v4429_v15  ;;  %v4050_v14 = vcombine.high %v138_v9, %v146_v10  ;;  %v153_v15 = vld [vmem:[#allocation5 + $0x390] sm:$0xff] }
  0xa4   :  { %3211 = vmatprep.subr.bf16.mxu0 %v4444_v16  ;;  %3293 = vmatprep.subr.bf16.mxu1 %v4446_v17  ;;  %v161_v16 = vld [vmem:[#allocation5 + $0x3d0] sm:$0xff]  ;;  %v154_v17 = vld [vmem:[#allocation5 + $0x398] sm:$0xff] }
  0xa5   :  { %v4064_v22 = vcombine.high %v153_v15, %v161_v16  ;;  %v4063_v28 = vcombine.low %v153_v15, %v161_v16  ;;  %v4065_v30 = vcombine.low %v154_v17, %v162_v18  ;;  %v274_v15 = vld [vmem:[#allocation5 + $0x758] sm:$0xff] }
  0xa7   :  { %3212 = vmatpush1.bf16.msra.mxu0 %v4443_v23  ;;  %3294 = vmatpush1.bf16.msra.mxu1 %v4445_v24  ;;  %v4066_v23 = vcombine.high %v154_v17, %v162_v18  ;;  %v169_v24 = vld [vmem:[#allocation5 + $0x410] sm:$0xff] }
  0xa8   :  { %3304 = vmatprep.subr.bf16.mxu0 %v3952_v25  ;;  %3386 = vmatprep.subr.bf16.mxu1 %v3954_v26  ;;  %v177_v25 = vld [vmem:[#allocation5 + $0x450] sm:$0xff]  ;;  %v170_v26 = vld [vmem:[#allocation5 + $0x418] sm:$0xff] }
  0xa9   :  { %v4080_v31 = vcombine.high %v169_v24, %v177_v25  ;;  %v4079_v37 = vcombine.low %v169_v24, %v177_v25  ;;  %v4081_v38 = vcombine.low %v170_v26, %v178_v27  ;;  %v290_v24 = vld [vmem:[#allocation5 + $0x7d8] sm:$0xff] }
  0xaa   :  { %3214 = vmatmul.mubr.bf16.vlgmr.msra.gmra.mrb[0].mxu0 %v4654_v59  ;;  %3296 = vmatmul.mubr.bf16.vlgmr.msra.gmra.mrb[0].mxu1 %v4654_v59 }
  0xab   :  { %3305 = vmatpush1.bf16.msra.mxu0 %v3951_v32  ;;  %3387 = vmatpush1.bf16.msra.mxu1 %v3953_v33  ;;  %v4082_v32 = vcombine.high %v170_v26, %v178_v27  ;;  %v185_v33 = vld [vmem:[#allocation5 + $0x490] sm:$0xff] }
  0xac   :  { %3306 = vmatprep.subr.bf16.mxu0 %v3968_v34  ;;  %3388 = vmatprep.subr.bf16.mxu1 %v3970_v35  ;;  %v193_v34 = vld [vmem:[#allocation5 + $0x4d0] sm:$0xff]  ;;  %v186_v35 = vld [vmem:[#allocation5 + $0x498] sm:$0xff] }
  0xad   :  { %3336 = vmatprep.mubr.bf16.mxu0 %v4636_v3  ;;  %3418 = vmatprep.mubr.bf16.mxu1 %v4636_v3  ;;  %v4096_v39 = vcombine.high %v185_v33, %v193_v34  ;;  %v4095_v45 = vcombine.low %v185_v33, %v193_v34  ;;  %v4097_v46 = vcombine.low %v186_v35, %v194_v36  ;;  %v306_v33 = vld [vmem:[#allocation5 + $0x858] sm:$0xff] }
  0xaf   :  { %3307 = vmatpush1.bf16.msra.mxu0 %v3967_v40  ;;  %3389 = vmatpush1.bf16.msra.mxu1 %v3969_v41  ;;  %v4098_v40 = vcombine.high %v186_v35, %v194_v36  ;;  %v201_v41 = vld [vmem:[#allocation5 + $0x510] sm:$0xff] }
  0xb0   :  { %3308 = vmatprep.subr.bf16.mxu0 %v3984_v42  ;;  %3390 = vmatprep.subr.bf16.mxu1 %v3986_v43  ;;  %v209_v42 = vld [vmem:[#allocation5 + $0x550] sm:$0xff]  ;;  %v202_v43 = vld [vmem:[#allocation5 + $0x518] sm:$0xff] }
  0xb1   :  { %v4112_v47 = vcombine.high %v201_v41, %v209_v42  ;;  %v4111_v53 = vcombine.low %v201_v41, %v209_v42  ;;  %v4113_v54 = vcombine.low %v202_v43, %v210_v44  ;;  %v322_v41 = vld [vmem:[#allocation5 + $0x8d8] sm:$0xff] }
  0xb3   :  { %3309 = vmatpush1.bf16.msra.mxu0 %v3983_v48  ;;  %3391 = vmatpush1.bf16.msra.mxu1 %v3985_v49  ;;  %v4114_v48 = vcombine.high %v202_v43, %v210_v44  ;;  %v217_v49 = vld [vmem:[#allocation5 + $0x590] sm:$0xff] }
  0xb4   :  { %3310 = vmatprep.subr.bf16.mxu0 %v4000_v50  ;;  %3392 = vmatprep.subr.bf16.mxu1 %v4002_v51  ;;  %v225_v50 = vld [vmem:[#allocation5 + $0x5d0] sm:$0xff]  ;;  %v218_v51 = vld [vmem:[#allocation5 + $0x598] sm:$0xff] }
  0xb5   :  { %v4128_v55 = vcombine.high %v217_v49, %v225_v50  ;;  %v4127_v63 = vcombine.low %v217_v49, %v225_v50  ;;  %v4129_v0 = vcombine.low %v218_v51, %v226_v52  ;;  %v338_v49 = vld [vmem:[#allocation5 + $0x958] sm:$0xff] }
  0xb7   :  { %3311 = vmatpush1.bf16.msra.mxu0 %v3999_v57  ;;  %3393 = vmatpush1.bf16.msra.mxu1 %v4001_v58  ;;  %v4130_v57 = vcombine.high %v218_v51, %v226_v52  ;;  %v233_v58 = vld [vmem:[#allocation5 + $0x610] sm:$0xff] }
  0xb8   :  { %3312 = vmatprep.subr.bf16.mxu0 %v4016_v60  ;;  %3394 = vmatprep.subr.bf16.mxu1 %v4018_v61  ;;  %v241_v60 = vld [vmem:[#allocation5 + $0x650] sm:$0xff]  ;;  %v234_v61 = vld [vmem:[#allocation5 + $0x618] sm:$0xff] }
  0xb9   :  { %v4144_v1 = vcombine.high %v233_v58, %v241_v60  ;;  %v4143_v8 = vcombine.low %v233_v58, %v241_v60  ;;  %v4145_v9 = vcombine.low %v234_v61, %v242_v62  ;;  %v354_v58 = vld [vmem:[#allocation5 + $0x9d8] sm:$0xff] }
  0xbb   :  { %3313 = vmatpush1.bf16.msra.mxu0 %v4015_v2  ;;  %3395 = vmatpush1.bf16.msra.mxu1 %v4017_v4  ;;  %v4146_v2 = vcombine.high %v234_v61, %v242_v62  ;;  %v249_v4 = vld [vmem:[#allocation5 + $0x690] sm:$0xff] }
  0xbc   :  { %3314 = vmatprep.subr.bf16.mxu0 %v4032_v5  ;;  %3396 = vmatprep.subr.bf16.mxu1 %v4034_v6  ;;  %v257_v5 = vld [vmem:[#allocation5 + $0x6d0] sm:$0xff]  ;;  %v250_v6 = vld [vmem:[#allocation5 + $0x698] sm:$0xff] }
  0xbd   :  { %v4160_v10 = vcombine.high %v249_v4, %v257_v5  ;;  %v4159_v16 = vcombine.low %v249_v4, %v257_v5  ;;  %v4161_v17 = vcombine.low %v250_v6, %v258_v7  ;;  %v370_v4 = vld [vmem:[#allocation5 + $0xa58] sm:$0xff] }
  0xbf   :  { %3315 = vmatpush1.bf16.msra.mxu0 %v4031_v11  ;;  %3397 = vmatpush1.bf16.msra.mxu1 %v4033_v12  ;;  %v4162_v11 = vcombine.high %v250_v6, %v258_v7  ;;  %v265_v12 = vld [vmem:[#allocation5 + $0x710] sm:$0xff] }
  0xc0   :  { %3316 = vmatprep.subr.bf16.mxu0 %v4048_v13  ;;  %3398 = vmatprep.subr.bf16.mxu1 %v4050_v14  ;;  %v273_v13 = vld [vmem:[#allocation5 + $0x750] sm:$0xff]  ;;  %v266_v14 = vld [vmem:[#allocation5 + $0x718] sm:$0xff] }
  0xc1   :  { %v4176_v18 = vcombine.high %v265_v12, %v273_v13  ;;  %v4175_v25 = vcombine.low %v265_v12, %v273_v13  ;;  %v4177_v26 = vcombine.low %v266_v14, %v274_v15  ;;  %v386_v12 = vld [vmem:[#allocation5 + $0xad8] sm:$0xff] }
  0xc3   :  { %3317 = vmatpush1.bf16.msra.mxu0 %v4047_v19  ;;  %3399 = vmatpush1.bf16.msra.mxu1 %v4049_v21  ;;  %v4178_v19 = vcombine.high %v266_v14, %v274_v15  ;;  %v281_v21 = vld [vmem:[#allocation5 + $0x790] sm:$0xff] }
  0xc4   :  { %3318 = vmatprep.subr.bf16.mxu0 %v4064_v22  ;;  %3400 = vmatprep.subr.bf16.mxu1 %v4066_v23  ;;  %v289_v22 = vld [vmem:[#allocation5 + $0x7d0] sm:$0xff]  ;;  %v282_v23 = vld [vmem:[#allocation5 + $0x798] sm:$0xff] }
  0xc5   :  { %v4192_v27 = vcombine.high %v281_v21, %v289_v22  ;;  %v4191_v34 = vcombine.low %v281_v21, %v289_v22  ;;  %v4193_v35 = vcombine.low %v282_v23, %v290_v24  ;;  %v402_v21 = vld [vmem:[#allocation5 + $0xb58] sm:$0xff] }
  0xc7   :  { %3319 = vmatpush1.bf16.msra.mxu0 %v4063_v28  ;;  %3401 = vmatpush1.bf16.msra.mxu1 %v4065_v30  ;;  %v4194_v28 = vcombine.high %v282_v23, %v290_v24  ;;  %v297_v30 = vld [vmem:[#allocation5 + $0x810] sm:$0xff] }
  0xc8   :  { %3320 = vmatprep.subr.bf16.mxu0 %v4080_v31  ;;  %3402 = vmatprep.subr.bf16.mxu1 %v4082_v32  ;;  %v305_v31 = vld [vmem:[#allocation5 + $0x850] sm:$0xff]  ;;  %v298_v32 = vld [vmem:[#allocation5 + $0x818] sm:$0xff] }
  0xc9   :  { %v4208_v36 = vcombine.high %v297_v30, %v305_v31  ;;  %v4207_v42 = vcombine.low %v297_v30, %v305_v31  ;;  %v4209_v43 = vcombine.low %v298_v32, %v306_v33  ;;  %v418_v30 = vld [vmem:[#allocation5 + $0xbd8] sm:$0xff] }
  0xcb   :  { %3321 = vmatpush1.bf16.msra.mxu0 %v4079_v37  ;;  %3403 = vmatpush1.bf16.msra.mxu1 %v4081_v38  ;;  %v4210_v37 = vcombine.high %v298_v32, %v306_v33  ;;  %v313_v38 = vld [vmem:[#allocation5 + $0x890] sm:$0xff] }
  0xcc   :  { %3322 = vmatprep.subr.bf16.mxu0 %v4096_v39  ;;  %3404 = vmatprep.subr.bf16.mxu1 %v4098_v40  ;;  %v321_v39 = vld [vmem:[#allocation5 + $0x8d0] sm:$0xff]  ;;  %v314_v40 = vld [vmem:[#allocation5 + $0x898] sm:$0xff] }
  0xcd   :  { %v4224_v44 = vcombine.high %v313_v38, %v321_v39  ;;  %v4223_v50 = vcombine.low %v313_v38, %v321_v39  ;;  %v4225_v51 = vcombine.low %v314_v40, %v322_v41  ;;  %v434_v38 = vld [vmem:[#allocation5 + $0xc58] sm:$0xff] }
  0xcf   :  { %3323 = vmatpush1.bf16.msra.mxu0 %v4095_v45  ;;  %3405 = vmatpush1.bf16.msra.mxu1 %v4097_v46  ;;  %v4226_v45 = vcombine.high %v314_v40, %v322_v41  ;;  %v329_v46 = vld [vmem:[#allocation5 + $0x910] sm:$0xff] }
  0xd0   :  { %3324 = vmatprep.subr.bf16.mxu0 %v4112_v47  ;;  %3406 = vmatprep.subr.bf16.mxu1 %v4114_v48  ;;  %v337_v47 = vld [vmem:[#allocation5 + $0x950] sm:$0xff]  ;;  %v330_v48 = vld [vmem:[#allocation5 + $0x918] sm:$0xff] }
  0xd1   :  { %v4240_v52 = vcombine.high %v329_v46, %v337_v47  ;;  %v4239_v60 = vcombine.low %v329_v46, %v337_v47  ;;  %v4241_v61 = vcombine.low %v330_v48, %v338_v49  ;;  %v450_v46 = vld [vmem:[#allocation5 + $0xcd8] sm:$0xff] }
  0xd3   :  { %3325 = vmatpush1.bf16.msra.mxu0 %v4111_v53  ;;  %3407 = vmatpush1.bf16.msra.mxu1 %v4113_v54  ;;  %v4242_v53 = vcombine.high %v330_v48, %v338_v49  ;;  %v345_v54 = vld [vmem:[#allocation5 + $0x990] sm:$0xff] }
  0xd4   :  { %3326 = vmatprep.subr.bf16.mxu0 %v4128_v55  ;;  %3408 = vmatprep.subr.bf16.mxu1 %v4130_v57  ;;  %v353_v55 = vld [vmem:[#allocation5 + $0x9d0] sm:$0xff]  ;;  %v346_v57 = vld [vmem:[#allocation5 + $0x998] sm:$0xff] }
  0xd5   :  { %v4256_v62 = vcombine.high %v345_v54, %v353_v55  ;;  %v4255_v5 = vcombine.low %v345_v54, %v353_v55  ;;  %v4257_v6 = vcombine.low %v346_v57, %v354_v58  ;;  %v466_v54 = vld [vmem:[#allocation5 + $0xd58] sm:$0xff] }
  0xd7   :  { %3327 = vmatpush1.bf16.msra.mxu0 %v4127_v63  ;;  %3409 = vmatpush1.bf16.msra.mxu1 %v4129_v0  ;;  %v4258_v63 = vcombine.high %v346_v57, %v354_v58  ;;  %v361_v0 = vld [vmem:[#allocation5 + $0xa10] sm:$0xff] }
  0xd8   :  { %3328 = vmatprep.subr.bf16.mxu0 %v4144_v1  ;;  %3410 = vmatprep.subr.bf16.mxu1 %v4146_v2  ;;  %v369_v1 = vld [vmem:[#allocation5 + $0xa50] sm:$0xff]  ;;  %v362_v2 = vld [vmem:[#allocation5 + $0xa18] sm:$0xff] }
  0xd9   :  { %v4272_v7 = vcombine.high %v361_v0, %v369_v1  ;;  %v4271_v13 = vcombine.low %v361_v0, %v369_v1  ;;  %v4273_v14 = vcombine.low %v362_v2, %v370_v4  ;;  %v482_v0 = vld [vmem:[#allocation5 + $0xdd8] sm:$0xff] }
  0xdb   :  { %3329 = vmatpush1.bf16.msra.mxu0 %v4143_v8  ;;  %3411 = vmatpush1.bf16.msra.mxu1 %v4145_v9  ;;  %v4274_v8 = vcombine.high %v362_v2, %v370_v4  ;;  %v377_v9 = vld [vmem:[#allocation5 + $0xa90] sm:$0xff] }
  0xdc   :  { %3330 = vmatprep.subr.bf16.mxu0 %v4160_v10  ;;  %3412 = vmatprep.subr.bf16.mxu1 %v4162_v11  ;;  %v385_v10 = vld [vmem:[#allocation5 + $0xad0] sm:$0xff]  ;;  %v378_v11 = vld [vmem:[#allocation5 + $0xa98] sm:$0xff] }
  0xdd   :  { %v4288_v15 = vcombine.high %v377_v9, %v385_v10  ;;  %v4287_v22 = vcombine.low %v377_v9, %v385_v10  ;;  %v4289_v23 = vcombine.low %v378_v11, %v386_v12  ;;  %v498_v9 = vld [vmem:[#allocation5 + $0xe58] sm:$0xff] }
  0xdf   :  { %3331 = vmatpush1.bf16.msra.mxu0 %v4159_v16  ;;  %3413 = vmatpush1.bf16.msra.mxu1 %v4161_v17  ;;  %v4290_v16 = vcombine.high %v378_v11, %v386_v12  ;;  %v393_v17 = vld [vmem:[#allocation5 + $0xb10] sm:$0xff] }
  0xe0   :  { %3332 = vmatprep.subr.bf16.mxu0 %v4176_v18  ;;  %3414 = vmatprep.subr.bf16.mxu1 %v4178_v19  ;;  %v401_v18 = vld [vmem:[#allocation5 + $0xb50] sm:$0xff]  ;;  %v394_v19 = vld [vmem:[#allocation5 + $0xb18] sm:$0xff] }
  0xe1   :  { %v4304_v24 = vcombine.high %v393_v17, %v401_v18  ;;  %v4303_v31 = vcombine.low %v393_v17, %v401_v18  ;;  %v4305_v32 = vcombine.low %v394_v19, %v402_v21  ;;  %v514_v17 = vld [vmem:[#allocation5 + $0xed8] sm:$0xff] }
  0xe3   :  { %3333 = vmatpush1.bf16.msra.mxu0 %v4175_v25  ;;  %3415 = vmatpush1.bf16.msra.mxu1 %v4177_v26  ;;  %v4306_v25 = vcombine.high %v394_v19, %v402_v21  ;;  %v409_v26 = vld [vmem:[#allocation5 + $0xb90] sm:$0xff] }
  0xe4   :  { %3334 = vmatprep.subr.bf16.mxu0 %v4192_v27  ;;  %3416 = vmatprep.subr.bf16.mxu1 %v4194_v28  ;;  %v417_v27 = vld [vmem:[#allocation5 + $0xbd0] sm:$0xff]  ;;  %v410_v28 = vld [vmem:[#allocation5 + $0xb98] sm:$0xff] }
  0xe5   :  { %v4320_v33 = vcombine.high %v409_v26, %v417_v27  ;;  %v4319_v39 = vcombine.low %v409_v26, %v417_v27  ;;  %v4321_v40 = vcombine.low %v410_v28, %v418_v30  ;;  %v530_v26 = vld [vmem:[#allocation5 + $0xf58] sm:$0xff] }
  0xe7   :  { %3335 = vmatpush1.bf16.msra.mxu0 %v4191_v34  ;;  %3417 = vmatpush1.bf16.msra.mxu1 %v4193_v35  ;;  %v4322_v34 = vcombine.high %v410_v28, %v418_v30  ;;  %v425_v35 = vld [vmem:[#allocation5 + $0xc10] sm:$0xff] }
  0xe8   :  { %3345 = vmatprep.subr.bf16.mxu0 %v4208_v36  ;;  %3427 = vmatprep.subr.bf16.mxu1 %v4210_v37  ;;  %v433_v36 = vld [vmem:[#allocation5 + $0xc50] sm:$0xff]  ;;  %v426_v37 = vld [vmem:[#allocation5 + $0xc18] sm:$0xff] }
  0xe9   :  { %v4336_v41 = vcombine.high %v425_v35, %v433_v36  ;;  %v4335_v47 = vcombine.low %v425_v35, %v433_v36  ;;  %v4337_v48 = vcombine.low %v426_v37, %v434_v38  ;;  %v546_v35 = vld [vmem:[#allocation5 + $0xfd8] sm:$0xff] }
  0xea   :  { %3337 = vmatmul.mubr.bf16.vlgmr.msra.gmra.mrb[4].mxu0 %v4642_v20  ;;  %3419 = vmatmul.mubr.bf16.vlgmr.msra.gmra.mrb[4].mxu1 %v4642_v20 }
  0xeb   :  { %3346 = vmatpush1.bf16.msra.mxu0 %v4207_v42  ;;  %3428 = vmatpush1.bf16.msra.mxu1 %v4209_v43  ;;  %v4338_v42 = vcombine.high %v426_v37, %v434_v38  ;;  %v441_v43 = vld [vmem:[#allocation5 + $0xc90] sm:$0xff] }
  0xec   :  { %3347 = vmatprep.subr.bf16.mxu0 %v4224_v44  ;;  %3429 = vmatprep.subr.bf16.mxu1 %v4226_v45  ;;  %v449_v44 = vld [vmem:[#allocation5 + $0xcd0] sm:$0xff]  ;;  %v442_v45 = vld [vmem:[#allocation5 + $0xc98] sm:$0xff] }
  0xed   :  { %3377 = vmatprep.mubr.bf16.mxu0 %v4646_v29  ;;  %3459 = vmatprep.mubr.bf16.mxu1 %v4646_v29  ;;  %v4352_v49 = vcombine.high %v441_v43, %v449_v44  ;;  %v4351_v55 = vcombine.low %v441_v43, %v449_v44  ;;  %v4353_v57 = vcombine.low %v442_v45, %v450_v46  ;;  %v52_v43 = vld [vmem:[#allocation5 + $0x68] sm:$0xff] }
  0xef   :  { %3348 = vmatpush1.bf16.msra.mxu0 %v4223_v50  ;;  %3430 = vmatpush1.bf16.msra.mxu1 %v4225_v51  ;;  %v4354_v50 = vcombine.high %v442_v45, %v450_v46  ;;  %v457_v51 = vld [vmem:[#allocation5 + $0xd10] sm:$0xff] }
  0xf0   :  { %3349 = vmatprep.subr.bf16.mxu0 %v4240_v52  ;;  %3431 = vmatprep.subr.bf16.mxu1 %v4242_v53  ;;  %v465_v52 = vld [vmem:[#allocation5 + $0xd50] sm:$0xff]  ;;  %v458_v53 = vld [vmem:[#allocation5 + $0xd18] sm:$0xff] }
  0xf1   :  { %v4368_v58 = vcombine.high %v457_v51, %v465_v52  ;;  %v4367_v1 = vcombine.low %v457_v51, %v465_v52  ;;  %v4369_v2 = vcombine.low %v458_v53, %v466_v54  ;;  %v68_v51 = vld [vmem:[#allocation5 + $0xe8] sm:$0xff] }
  0xf3   :  { %3350 = vmatpush1.bf16.msra.mxu0 %v4239_v60  ;;  %3432 = vmatpush1.bf16.msra.mxu1 %v4241_v61  ;;  %v4370_v60 = vcombine.high %v458_v53, %v466_v54  ;;  %v473_v61 = vld [vmem:[#allocation5 + $0xd90] sm:$0xff] }
  0xf4   :  { %3351 = vmatprep.subr.bf16.mxu0 %v4256_v62  ;;  %3433 = vmatprep.subr.bf16.mxu1 %v4258_v63  ;;  %v481_v62 = vld [vmem:[#allocation5 + $0xdd0] sm:$0xff]  ;;  %v474_v63 = vld [vmem:[#allocation5 + $0xd98] sm:$0xff] }
  0xf5   :  { %v4384_v4 = vcombine.high %v473_v61, %v481_v62  ;;  %v4383_v10 = vcombine.low %v473_v61, %v481_v62  ;;  %v4385_v11 = vcombine.low %v474_v63, %v482_v0  ;;  %v84_v61 = vld [vmem:[#allocation5 + $0x168] sm:$0xff] }
  0xf7   :  { %3352 = vmatpush1.bf16.msra.mxu0 %v4255_v5  ;;  %3434 = vmatpush1.bf16.msra.mxu1 %v4257_v6  ;;  %v4386_v5 = vcombine.high %v474_v63, %v482_v0  ;;  %v489_v6 = vld [vmem:[#allocation5 + $0xe10] sm:$0xff] }
  0xf8   :  { %3353 = vmatprep.subr.bf16.mxu0 %v4272_v7  ;;  %3435 = vmatprep.subr.bf16.mxu1 %v4274_v8  ;;  %v497_v7 = vld [vmem:[#allocation5 + $0xe50] sm:$0xff]  ;;  %v490_v8 = vld [vmem:[#allocation5 + $0xe18] sm:$0xff] }
  0xf9   :  { %v4400_v12 = vcombine.high %v489_v6, %v497_v7  ;;  %v4399_v18 = vcombine.low %v489_v6, %v497_v7  ;;  %v4401_v19 = vcombine.low %v490_v8, %v498_v9  ;;  %v100_v6 = vld [vmem:[#allocation5 + $0x1e8] sm:$0xff] }
  0xfb   :  { %3354 = vmatpush1.bf16.msra.mxu0 %v4271_v13  ;;  %3436 = vmatpush1.bf16.msra.mxu1 %v4273_v14  ;;  %v4402_v13 = vcombine.high %v490_v8, %v498_v9  ;;  %v505_v14 = vld [vmem:[#allocation5 + $0xe90] sm:$0xff] }
  0xfc   :  { %3355 = vmatprep.subr.bf16.mxu0 %v4288_v15  ;;  %3437 = vmatprep.subr.bf16.mxu1 %v4290_v16  ;;  %v513_v15 = vld [vmem:[#allocation5 + $0xed0] sm:$0xff]  ;;  %v506_v16 = vld [vmem:[#allocation5 + $0xe98] sm:$0xff] }
  0xfd   :  { %v4416_v21 = vcombine.high %v505_v14, %v513_v15  ;;  %v4415_v27 = vcombine.low %v505_v14, %v513_v15  ;;  %v4417_v28 = vcombine.low %v506_v16, %v514_v17  ;;  %v116_v14 = vld [vmem:[#allocation5 + $0x268] sm:$0xff] }
  0xff   :  { %3356 = vmatpush1.bf16.msra.mxu0 %v4287_v22  ;;  %3438 = vmatpush1.bf16.msra.mxu1 %v4289_v23  ;;  %v4418_v22 = vcombine.high %v506_v16, %v514_v17  ;;  %v521_v23 = vld [vmem:[#allocation5 + $0xf10] sm:$0xff] }
 0x100   :  { %3357 = vmatprep.subr.bf16.mxu0 %v4304_v24  ;;  %3439 = vmatprep.subr.bf16.mxu1 %v4306_v25  ;;  %v529_v24 = vld [vmem:[#allocation5 + $0xf50] sm:$0xff]  ;;  %v522_v25 = vld [vmem:[#allocation5 + $0xf18] sm:$0xff] }
 0x101   :  { %v4432_v30 = vcombine.high %v521_v23, %v529_v24  ;;  %v4431_v36 = vcombine.low %v521_v23, %v529_v24  ;;  %v4433_v37 = vcombine.low %v522_v25, %v530_v26  ;;  %v132_v23 = vld [vmem:[#allocation5 + $0x2e8] sm:$0xff] }
 0x103   :  { %3358 = vmatpush1.bf16.msra.mxu0 %v4303_v31  ;;  %3440 = vmatpush1.bf16.msra.mxu1 %v4305_v32  ;;  %v4434_v31 = vcombine.high %v522_v25, %v530_v26  ;;  %v537_v32 = vld [vmem:[#allocation5 + $0xf90] sm:$0xff] }
 0x104   :  { %3359 = vmatprep.subr.bf16.mxu0 %v4320_v33  ;;  %3441 = vmatprep.subr.bf16.mxu1 %v4322_v34  ;;  %v545_v33 = vld [vmem:[#allocation5 + $0xfd0] sm:$0xff]  ;;  %v538_v34 = vld [vmem:[#allocation5 + $0xf98] sm:$0xff] }
 0x105   :  { %v4448_v38 = vcombine.high %v537_v32, %v545_v33  ;;  %v4447_v44 = vcombine.low %v537_v32, %v545_v33  ;;  %v4449_v45 = vcombine.low %v538_v34, %v546_v35  ;;  %v148_v32 = vld [vmem:[#allocation5 + $0x368] sm:$0xff] }
 0x107   :  { %3360 = vmatpush1.bf16.msra.mxu0 %v4319_v39  ;;  %3442 = vmatpush1.bf16.msra.mxu1 %v4321_v40  ;;  %v4450_v39 = vcombine.high %v538_v34, %v546_v35  ;;  %v43_v40 = vld [vmem:[#allocation5 + $0x20] sm:$0xff] }
 0x108   :  { %3361 = vmatprep.subr.bf16.mxu0 %v4336_v41  ;;  %3443 = vmatprep.subr.bf16.mxu1 %v4338_v42  ;;  %v51_v41 = vld [vmem:[#allocation5 + $0x60] sm:$0xff]  ;;  %v44_v42 = vld [vmem:[#allocation5 + $0x28] sm:$0xff] }
 0x109   :  { %v3956_v46 = vcombine.high %v43_v40, %v51_v41  ;;  %v3955_v52 = vcombine.low %v43_v40, %v51_v41  ;;  %v3957_v53 = vcombine.low %v44_v42, %v52_v43  ;;  %v164_v40 = vld [vmem:[#allocation5 + $0x3e8] sm:$0xff] }
 0x10b   :  { %3362 = vmatpush1.bf16.msra.mxu0 %v4335_v47  ;;  %3444 = vmatpush1.bf16.msra.mxu1 %v4337_v48  ;;  %v3958_v47 = vcombine.high %v44_v42, %v52_v43  ;;  %v59_v48 = vld [vmem:[#allocation5 + $0xa0] sm:$0xff] }
 0x10c   :  { %3363 = vmatprep.subr.bf16.mxu0 %v4352_v49  ;;  %3445 = vmatprep.subr.bf16.mxu1 %v4354_v50  ;;  %v67_v49 = vld [vmem:[#allocation5 + $0xe0] sm:$0xff]  ;;  %v60_v50 = vld [vmem:[#allocation5 + $0xa8] sm:$0xff] }
 0x10d   :  { %v3972_v54 = vcombine.high %v59_v48, %v67_v49  ;;  %v3971_v62 = vcombine.low %v59_v48, %v67_v49  ;;  %v3973_v63 = vcombine.low %v60_v50, %v68_v51  ;;  %v180_v48 = vld [vmem:[#allocation5 + $0x468] sm:$0xff] }
 0x10f   :  { %3364 = vmatpush1.bf16.msra.mxu0 %v4351_v55  ;;  %3446 = vmatpush1.bf16.msra.mxu1 %v4353_v57  ;;  %v3974_v55 = vcombine.high %v60_v50, %v68_v51  ;;  %v75_v57 = vld [vmem:[#allocation5 + $0x120] sm:$0xff] }
 0x110   :  { %3365 = vmatprep.subr.bf16.mxu0 %v4368_v58  ;;  %3447 = vmatprep.subr.bf16.mxu1 %v4370_v60  ;;  %v83_v58 = vld [vmem:[#allocation5 + $0x160] sm:$0xff]  ;;  %v76_v60 = vld [vmem:[#allocation5 + $0x128] sm:$0xff] }
 0x111   :  { %v3988_v0 = vcombine.high %v75_v57, %v83_v58  ;;  %v3987_v7 = vcombine.low %v75_v57, %v83_v58  ;;  %v3989_v8 = vcombine.low %v76_v60, %v84_v61  ;;  %v196_v57 = vld [vmem:[#allocation5 + $0x4e8] sm:$0xff] }
 0x113   :  { %3366 = vmatpush1.bf16.msra.mxu0 %v4367_v1  ;;  %3448 = vmatpush1.bf16.msra.mxu1 %v4369_v2  ;;  %v3990_v1 = vcombine.high %v76_v60, %v84_v61  ;;  %v91_v2 = vld [vmem:[#allocation5 + $0x1a0] sm:$0xff] }
 0x114   :  { %3367 = vmatprep.subr.bf16.mxu0 %v4384_v4  ;;  %3449 = vmatprep.subr.bf16.mxu1 %v4386_v5  ;;  %v99_v4 = vld [vmem:[#allocation5 + $0x1e0] sm:$0xff]  ;;  %v92_v5 = vld [vmem:[#allocation5 + $0x1a8] sm:$0xff] }
 0x115   :  { %v4004_v9 = vcombine.high %v91_v2, %v99_v4  ;;  %v4003_v15 = vcombine.low %v91_v2, %v99_v4  ;;  %v4005_v16 = vcombine.low %v92_v5, %v100_v6  ;;  %v212_v2 = vld [vmem:[#allocation5 + $0x568] sm:$0xff] }
 0x117   :  { %3368 = vmatpush1.bf16.msra.mxu0 %v4383_v10  ;;  %3450 = vmatpush1.bf16.msra.mxu1 %v4385_v11  ;;  %v4006_v10 = vcombine.high %v92_v5, %v100_v6  ;;  %v107_v11 = vld [vmem:[#allocation5 + $0x220] sm:$0xff] }
 0x118   :  { %3369 = vmatprep.subr.bf16.mxu0 %v4400_v12  ;;  %3451 = vmatprep.subr.bf16.mxu1 %v4402_v13  ;;  %v115_v12 = vld [vmem:[#allocation5 + $0x260] sm:$0xff]  ;;  %v108_v13 = vld [vmem:[#allocation5 + $0x228] sm:$0xff] }
 0x119   :  { %v4020_v17 = vcombine.high %v107_v11, %v115_v12  ;;  %v4019_v24 = vcombine.low %v107_v11, %v115_v12  ;;  %v4021_v25 = vcombine.low %v108_v13, %v116_v14  ;;  %v228_v11 = vld [vmem:[#allocation5 + $0x5e8] sm:$0xff] }
 0x11b   :  { %3370 = vmatpush1.bf16.msra.mxu0 %v4399_v18  ;;  %3452 = vmatpush1.bf16.msra.mxu1 %v4401_v19  ;;  %v4022_v18 = vcombine.high %v108_v13, %v116_v14  ;;  %v123_v19 = vld [vmem:[#allocation5 + $0x2a0] sm:$0xff] }
 0x11c   :  { %3371 = vmatprep.subr.bf16.mxu0 %v4416_v21  ;;  %3453 = vmatprep.subr.bf16.mxu1 %v4418_v22  ;;  %v131_v21 = vld [vmem:[#allocation5 + $0x2e0] sm:$0xff]  ;;  %v124_v22 = vld [vmem:[#allocation5 + $0x2a8] sm:$0xff] }
 0x11d   :  { %v4036_v26 = vcombine.high %v123_v19, %v131_v21  ;;  %v4035_v33 = vcombine.low %v123_v19, %v131_v21  ;;  %v4037_v34 = vcombine.low %v124_v22, %v132_v23  ;;  %v244_v19 = vld [vmem:[#allocation5 + $0x668] sm:$0xff] }
 0x11f   :  { %3372 = vmatpush1.bf16.msra.mxu0 %v4415_v27  ;;  %3454 = vmatpush1.bf16.msra.mxu1 %v4417_v28  ;;  %v4038_v27 = vcombine.high %v124_v22, %v132_v23  ;;  %v139_v28 = vld [vmem:[#allocation5 + $0x320] sm:$0xff] }
 0x120   :  { %3373 = vmatprep.subr.bf16.mxu0 %v4432_v30  ;;  %3455 = vmatprep.subr.bf16.mxu1 %v4434_v31  ;;  %v147_v30 = vld [vmem:[#allocation5 + $0x360] sm:$0xff]  ;;  %v140_v31 = vld [vmem:[#allocation5 + $0x328] sm:$0xff] }
 0x121   :  { %v4052_v35 = vcombine.high %v139_v28, %v147_v30  ;;  %v4051_v41 = vcombine.low %v139_v28, %v147_v30  ;;  %v4053_v42 = vcombine.low %v140_v31, %v148_v32  ;;  %v260_v28 = vld [vmem:[#allocation5 + $0x6e8] sm:$0xff] }
 0x123   :  { %3374 = vmatpush1.bf16.msra.mxu0 %v4431_v36  ;;  %3456 = vmatpush1.bf16.msra.mxu1 %v4433_v37  ;;  %v4054_v36 = vcombine.high %v140_v31, %v148_v32  ;;  %v155_v37 = vld [vmem:[#allocation5 + $0x3a0] sm:$0xff] }
 0x124   :  { %3375 = vmatprep.subr.bf16.mxu0 %v4448_v38  ;;  %3457 = vmatprep.subr.bf16.mxu1 %v4450_v39  ;;  %v163_v38 = vld [vmem:[#allocation5 + $0x3e0] sm:$0xff]  ;;  %v156_v39 = vld [vmem:[#allocation5 + $0x3a8] sm:$0xff] }
 0x125   :  { %v4068_v43 = vcombine.high %v155_v37, %v163_v38  ;;  %v4067_v49 = vcombine.low %v155_v37, %v163_v38  ;;  %v4069_v50 = vcombine.low %v156_v39, %v164_v40  ;;  %v276_v37 = vld [vmem:[#allocation5 + $0x768] sm:$0xff] }
 0x127   :  { %3376 = vmatpush1.bf16.msra.mxu0 %v4447_v44  ;;  %3458 = vmatpush1.bf16.msra.mxu1 %v4449_v45  ;;  %v4070_v44 = vcombine.high %v156_v39, %v164_v40  ;;  %v171_v45 = vld [vmem:[#allocation5 + $0x420] sm:$0xff] }
 0x128   :  { %3468 = vmatprep.subr.bf16.mxu0 %v3956_v46  ;;  %3550 = vmatprep.subr.bf16.mxu1 %v3958_v47  ;;  %v179_v46 = vld [vmem:[#allocation5 + $0x460] sm:$0xff]  ;;  %v172_v47 = vld [vmem:[#allocation5 + $0x428] sm:$0xff] }
 0x129   :  { %v4084_v51 = vcombine.high %v171_v45, %v179_v46  ;;  %v4083_v58 = vcombine.low %v171_v45, %v179_v46  ;;  %v4085_v60 = vcombine.low %v172_v47, %v180_v48  ;;  %v292_v45 = vld [vmem:[#allocation5 + $0x7e8] sm:$0xff] }
 0x12a   :  { %3378 = vmatmul.mubr.bf16.vlgmr.msra.gmra.mrb[4].mxu0 %v4654_v59  ;;  %3460 = vmatmul.mubr.bf16.vlgmr.msra.gmra.mrb[4].mxu1 %v4654_v59 }
 0x12b   :  { %3469 = vmatpush1.bf16.msra.mxu0 %v3955_v52  ;;  %3551 = vmatpush1.bf16.msra.mxu1 %v3957_v53  ;;  %v4086_v52 = vcombine.high %v172_v47, %v180_v48  ;;  %v187_v53 = vld [vmem:[#allocation5 + $0x4a0] sm:$0xff] }
 0x12c   :  { %3470 = vmatprep.subr.bf16.mxu0 %v3972_v54  ;;  %3552 = vmatprep.subr.bf16.mxu1 %v3974_v55  ;;  %v195_v54 = vld [vmem:[#allocation5 + $0x4e0] sm:$0xff]  ;;  %v188_v55 = vld [vmem:[#allocation5 + $0x4a8] sm:$0xff] }
 0x12d   :  { %3500 = vmatprep.mubr.bf16.mxu0 %v4636_v3  ;;  %3582 = vmatprep.mubr.bf16.mxu1 %v4636_v3  ;;  %v4100_v61 = vcombine.high %v187_v53, %v195_v54  ;;  %v4099_v4 = vcombine.low %v187_v53, %v195_v54  ;;  %v4101_v5 = vcombine.low %v188_v55, %v196_v57  ;;  %v308_v53 = vld [vmem:[#allocation5 + $0x868] sm:$0xff] }
 0x12f   :  { %3471 = vmatpush1.bf16.msra.mxu0 %v3971_v62  ;;  %3553 = vmatpush1.bf16.msra.mxu1 %v3973_v63  ;;  %v4102_v62 = vcombine.high %v188_v55, %v196_v57  ;;  %v203_v63 = vld [vmem:[#allocation5 + $0x520] sm:$0xff] }
 0x130   :  { %3472 = vmatprep.subr.bf16.mxu0 %v3988_v0  ;;  %3554 = vmatprep.subr.bf16.mxu1 %v3990_v1  ;;  %v211_v0 = vld [vmem:[#allocation5 + $0x560] sm:$0xff]  ;;  %v204_v1 = vld [vmem:[#allocation5 + $0x528] sm:$0xff] }
 0x131   :  { %v4116_v6 = vcombine.high %v203_v63, %v211_v0  ;;  %v4115_v12 = vcombine.low %v203_v63, %v211_v0  ;;  %v4117_v13 = vcombine.low %v204_v1, %v212_v2  ;;  %v324_v63 = vld [vmem:[#allocation5 + $0x8e8] sm:$0xff] }
 0x133   :  { %3473 = vmatpush1.bf16.msra.mxu0 %v3987_v7  ;;  %3555 = vmatpush1.bf16.msra.mxu1 %v3989_v8  ;;  %v4118_v7 = vcombine.high %v204_v1, %v212_v2  ;;  %v219_v8 = vld [vmem:[#allocation5 + $0x5a0] sm:$0xff] }
 0x134   :  { %3474 = vmatprep.subr.bf16.mxu0 %v4004_v9  ;;  %3556 = vmatprep.subr.bf16.mxu1 %v4006_v10  ;;  %v227_v9 = vld [vmem:[#allocation5 + $0x5e0] sm:$0xff]  ;;  %v220_v10 = vld [vmem:[#allocation5 + $0x5a8] sm:$0xff] }
 0x135   :  { %v4132_v14 = vcombine.high %v219_v8, %v227_v9  ;;  %v4131_v21 = vcombine.low %v219_v8, %v227_v9  ;;  %v4133_v22 = vcombine.low %v220_v10, %v228_v11  ;;  %v340_v8 = vld [vmem:[#allocation5 + $0x968] sm:$0xff] }
 0x137   :  { %3475 = vmatpush1.bf16.msra.mxu0 %v4003_v15  ;;  %3557 = vmatpush1.bf16.msra.mxu1 %v4005_v16  ;;  %v4134_v15 = vcombine.high %v220_v10, %v228_v11  ;;  %v235_v16 = vld [vmem:[#allocation5 + $0x620] sm:$0xff] }
 0x138   :  { %3476 = vmatprep.subr.bf16.mxu0 %v4020_v17  ;;  %3558 = vmatprep.subr.bf16.mxu1 %v4022_v18  ;;  %v243_v17 = vld [vmem:[#allocation5 + $0x660] sm:$0xff]  ;;  %v236_v18 = vld [vmem:[#allocation5 + $0x628] sm:$0xff] }
 0x139   :  { %v4148_v23 = vcombine.high %v235_v16, %v243_v17  ;;  %v4147_v30 = vcombine.low %v235_v16, %v243_v17  ;;  %v4149_v31 = vcombine.low %v236_v18, %v244_v19  ;;  %v356_v16 = vld [vmem:[#allocation5 + $0x9e8] sm:$0xff] }
 0x13b   :  { %3477 = vmatpush1.bf16.msra.mxu0 %v4019_v24  ;;  %3559 = vmatpush1.bf16.msra.mxu1 %v4021_v25  ;;  %v4150_v24 = vcombine.high %v236_v18, %v244_v19  ;;  %v251_v25 = vld [vmem:[#allocation5 + $0x6a0] sm:$0xff] }
 0x13c   :  { %3478 = vmatprep.subr.bf16.mxu0 %v4036_v26  ;;  %3560 = vmatprep.subr.bf16.mxu1 %v4038_v27  ;;  %v259_v26 = vld [vmem:[#allocation5 + $0x6e0] sm:$0xff]  ;;  %v252_v27 = vld [vmem:[#allocation5 + $0x6a8] sm:$0xff] }
 0x13d   :  { %v4164_v32 = vcombine.high %v251_v25, %v259_v26  ;;  %v4163_v38 = vcombine.low %v251_v25, %v259_v26  ;;  %v4165_v39 = vcombine.low %v252_v27, %v260_v28  ;;  %v372_v25 = vld [vmem:[#allocation5 + $0xa68] sm:$0xff] }
 0x13f   :  { %3479 = vmatpush1.bf16.msra.mxu0 %v4035_v33  ;;  %3561 = vmatpush1.bf16.msra.mxu1 %v4037_v34  ;;  %v4166_v33 = vcombine.high %v252_v27, %v260_v28  ;;  %v267_v34 = vld [vmem:[#allocation5 + $0x720] sm:$0xff] }
 0x140   :  { %3480 = vmatprep.subr.bf16.mxu0 %v4052_v35  ;;  %3562 = vmatprep.subr.bf16.mxu1 %v4054_v36  ;;  %v275_v35 = vld [vmem:[#allocation5 + $0x760] sm:$0xff]  ;;  %v268_v36 = vld [vmem:[#allocation5 + $0x728] sm:$0xff] }
 0x141   :  { %v4180_v40 = vcombine.high %v267_v34, %v275_v35  ;;  %v4179_v46 = vcombine.low %v267_v34, %v275_v35  ;;  %v4181_v47 = vcombine.low %v268_v36, %v276_v37  ;;  %v388_v34 = vld [vmem:[#allocation5 + $0xae8] sm:$0xff] }
 0x143   :  { %3481 = vmatpush1.bf16.msra.mxu0 %v4051_v41  ;;  %3563 = vmatpush1.bf16.msra.mxu1 %v4053_v42  ;;  %v4182_v41 = vcombine.high %v268_v36, %v276_v37  ;;  %v283_v42 = vld [vmem:[#allocation5 + $0x7a0] sm:$0xff] }
 0x144   :  { %3482 = vmatprep.subr.bf16.mxu0 %v4068_v43  ;;  %3564 = vmatprep.subr.bf16.mxu1 %v4070_v44  ;;  %v291_v43 = vld [vmem:[#allocation5 + $0x7e0] sm:$0xff]  ;;  %v284_v44 = vld [vmem:[#allocation5 + $0x7a8] sm:$0xff] }
 0x145   :  { %v4196_v48 = vcombine.high %v283_v42, %v291_v43  ;;  %v4195_v54 = vcombine.low %v283_v42, %v291_v43  ;;  %v4197_v55 = vcombine.low %v284_v44, %v292_v45  ;;  %v404_v42 = vld [vmem:[#allocation5 + $0xb68] sm:$0xff] }
 0x147   :  { %3483 = vmatpush1.bf16.msra.mxu0 %v4067_v49  ;;  %3565 = vmatpush1.bf16.msra.mxu1 %v4069_v50  ;;  %v4198_v49 = vcombine.high %v284_v44, %v292_v45  ;;  %v299_v50 = vld [vmem:[#allocation5 + $0x820] sm:$0xff] }
 0x148   :  { %3484 = vmatprep.subr.bf16.mxu0 %v4084_v51  ;;  %3566 = vmatprep.subr.bf16.mxu1 %v4086_v52  ;;  %v307_v51 = vld [vmem:[#allocation5 + $0x860] sm:$0xff]  ;;  %v300_v52 = vld [vmem:[#allocation5 + $0x828] sm:$0xff] }
 0x149   :  { %v4212_v57 = vcombine.high %v299_v50, %v307_v51  ;;  %v4211_v0 = vcombine.low %v299_v50, %v307_v51  ;;  %v4213_v1 = vcombine.low %v300_v52, %v308_v53 }
 0x14b   :  { %3485 = vmatpush1.bf16.msra.mxu0 %v4083_v58  ;;  %3567 = vmatpush1.bf16.msra.mxu1 %v4085_v60  ;;  %v4214_v58 = vcombine.high %v300_v52, %v308_v53  ;;  %v315_v60 = vld [vmem:[#allocation5 + $0x8a0] sm:$0xff]  ;;  %v412_v52 = vld [vmem:[#allocation5 + $0xba8] sm:$0xff] }
 0x14c   :  { %3486 = vmatprep.subr.bf16.mxu0 %v4100_v61  ;;  %3568 = vmatprep.subr.bf16.mxu1 %v4102_v62  ;;  %v323_v61 = vld [vmem:[#allocation5 + $0x8e0] sm:$0xff]  ;;  %v316_v62 = vld [vmem:[#allocation5 + $0x8a8] sm:$0xff] }
 0x14d   :  { %v4228_v2 = vcombine.high %v315_v60, %v323_v61  ;;  %v4227_v9 = vcombine.low %v315_v60, %v323_v61  ;;  %v4229_v10 = vcombine.low %v316_v62, %v324_v63  ;;  %v420_v53 = vld [vmem:[#allocation5 + $0xbe8] sm:$0xff] }
 0x14f   :  { %3487 = vmatpush1.bf16.msra.mxu0 %v4099_v4  ;;  %3569 = vmatpush1.bf16.msra.mxu1 %v4101_v5  ;;  %v4230_v4 = vcombine.high %v316_v62, %v324_v63  ;;  %v331_v5 = vld [vmem:[#allocation5 + $0x920] sm:$0xff] }
 0x150   :  { %3488 = vmatprep.subr.bf16.mxu0 %v4116_v6  ;;  %3570 = vmatprep.subr.bf16.mxu1 %v4118_v7  ;;  %v339_v6 = vld [vmem:[#allocation5 + $0x960] sm:$0xff]  ;;  %v332_v7 = vld [vmem:[#allocation5 + $0x928] sm:$0xff] }
 0x151   :  { %v4244_v11 = vcombine.high %v331_v5, %v339_v6  ;;  %v4243_v17 = vcombine.low %v331_v5, %v339_v6  ;;  %v4245_v18 = vcombine.low %v332_v7, %v340_v8  ;;  %v427_v5 = vld [vmem:[#allocation5 + $0xc20] sm:$0xff] }
 0x152   :  { %v435_v6 = vld [vmem:[#allocation5 + $0xc60] sm:$0xff] }
 0x153   :  { %3489 = vmatpush1.bf16.msra.mxu0 %v4115_v12  ;;  %3571 = vmatpush1.bf16.msra.mxu1 %v4117_v13  ;;  %v4246_v12 = vcombine.high %v332_v7, %v340_v8  ;;  %v347_v13 = vld [vmem:[#allocation5 + $0x9a0] sm:$0xff]  ;;  %v428_v8 = vld [vmem:[#allocation5 + $0xc28] sm:$0xff] }
 0x154   :  { %3490 = vmatprep.subr.bf16.mxu0 %v4132_v14  ;;  %3572 = vmatprep.subr.bf16.mxu1 %v4134_v15  ;;  %v355_v14 = vld [vmem:[#allocation5 + $0x9e0] sm:$0xff]  ;;  %v348_v15 = vld [vmem:[#allocation5 + $0x9a8] sm:$0xff] }
 0x155   :  { %v4260_v19 = vcombine.high %v347_v13, %v355_v14  ;;  %v4259_v26 = vcombine.low %v347_v13, %v355_v14  ;;  %v4261_v27 = vcombine.low %v348_v15, %v356_v16  ;;  %v4340_v13 = vcombine.high %v427_v5, %v435_v6 }
 0x157   :  { %3491 = vmatpush1.bf16.msra.mxu0 %v4131_v21  ;;  %3573 = vmatpush1.bf16.msra.mxu1 %v4133_v22  ;;  %v4262_v21 = vcombine.high %v348_v15, %v356_v16  ;;  %v363_v22 = vld [vmem:[#allocation5 + $0xa20] sm:$0xff] }
 0x158   :  { %3492 = vmatprep.subr.bf16.mxu0 %v4148_v23  ;;  %3574 = vmatprep.subr.bf16.mxu1 %v4150_v24  ;;  %v371_v23 = vld [vmem:[#allocation5 + $0xa60] sm:$0xff]  ;;  %v364_v24 = vld [vmem:[#allocation5 + $0xa28] sm:$0xff] }
 0x159   :  { %v4276_v28 = vcombine.high %v363_v22, %v371_v23  ;;  %v4275_v35 = vcombine.low %v363_v22, %v371_v23  ;;  %v4277_v36 = vcombine.low %v364_v24, %v372_v25  ;;  %v443_v15 = vld [vmem:[#allocation5 + $0xca0] sm:$0xff] }
 0x15a   :  { %v451_v16 = vld [vmem:[#allocation5 + $0xce0] sm:$0xff] }
 0x15b   :  { %3493 = vmatpush1.bf16.msra.mxu0 %v4147_v30  ;;  %3575 = vmatpush1.bf16.msra.mxu1 %v4149_v31  ;;  %v4278_v30 = vcombine.high %v364_v24, %v372_v25  ;;  %v379_v31 = vld [vmem:[#allocation5 + $0xaa0] sm:$0xff]  ;;  %v4356_v22 = vcombine.high %v443_v15, %v451_v16 }
 0x15c   :  { %3494 = vmatprep.subr.bf16.mxu0 %v4164_v32  ;;  %3576 = vmatprep.subr.bf16.mxu1 %v4166_v33  ;;  %v387_v32 = vld [vmem:[#allocation5 + $0xae0] sm:$0xff]  ;;  %v380_v33 = vld [vmem:[#allocation5 + $0xaa8] sm:$0xff] }
 0x15d   :  { %v4292_v37 = vcombine.high %v379_v31, %v387_v32  ;;  %v4291_v43 = vcombine.low %v379_v31, %v387_v32  ;;  %v4293_v44 = vcombine.low %v380_v33, %v388_v34  ;;  %v459_v24 = vld [vmem:[#allocation5 + $0xd20] sm:$0xff] }
 0x15e   :  { %v467_v25 = vld [vmem:[#allocation5 + $0xd60] sm:$0xff] }
 0x15f   :  { %3495 = vmatpush1.bf16.msra.mxu0 %v4163_v38  ;;  %3577 = vmatpush1.bf16.msra.mxu1 %v4165_v39  ;;  %v4294_v38 = vcombine.high %v380_v33, %v388_v34  ;;  %v395_v39 = vld [vmem:[#allocation5 + $0xb20] sm:$0xff]  ;;  %v4372_v31 = vcombine.high %v459_v24, %v467_v25 }
 0x160   :  { %3496 = vmatprep.subr.bf16.mxu0 %v4180_v40  ;;  %3578 = vmatprep.subr.bf16.mxu1 %v4182_v41  ;;  %v403_v40 = vld [vmem:[#allocation5 + $0xb60] sm:$0xff]  ;;  %v396_v41 = vld [vmem:[#allocation5 + $0xb28] sm:$0xff] }
 0x161   :  { %v4308_v45 = vcombine.high %v395_v39, %v403_v40  ;;  %v4309_v63 = vcombine.low %v396_v41, %v404_v42  ;;  %v475_v33 = vld [vmem:[#allocation5 + $0xda0] sm:$0xff] }
 0x162   :  { %v483_v34 = vld [vmem:[#allocation5 + $0xde0] sm:$0xff] }
 0x163   :  { %3497 = vmatpush1.bf16.msra.mxu0 %v4179_v46  ;;  %3579 = vmatpush1.bf16.msra.mxu1 %v4181_v47  ;;  %v4310_v47 = vcombine.high %v396_v41, %v404_v42  ;;  %v491_v41 = vld [vmem:[#allocation5 + $0xe20] sm:$0xff] }
 0x164   :  { %3498 = vmatprep.subr.bf16.mxu0 %v4196_v48  ;;  %3580 = vmatprep.subr.bf16.mxu1 %v4198_v49  ;;  %v411_v48 = vld [vmem:[#allocation5 + $0xba0] sm:$0xff] }
 0x165   :  { %v419_v49 = vld [vmem:[#allocation5 + $0xbe0] sm:$0xff] }
 0x166   :  { %v499_v42 = vld [vmem:[#allocation5 + $0xe60] sm:$0xff] }
 0x167   :  { %3499 = vmatpush1.bf16.msra.mxu0 %v4195_v54  ;;  %3581 = vmatpush1.bf16.msra.mxu1 %v4197_v55 }
 0x168   :  { %3509 = vmatprep.subr.bf16.mxu0 %v4212_v57  ;;  %3591 = vmatprep.subr.bf16.mxu1 %v4214_v58  ;;  %v4307_v58 = vcombine.low %v395_v39, %v403_v40  ;;  %v4388_v39 = vcombine.high %v475_v33, %v483_v34 }
 0x16a   :  { %3501 = vmatmul.mubr.bf16.vlgmr.msra.gmra.mrb[8].mxu0 %v4642_v20  ;;  %3583 = vmatmul.mubr.bf16.vlgmr.msra.gmra.mrb[8].mxu1 %v4642_v20 }
 0x16b   :  { %3510 = vmatpush1.bf16.msra.mxu0 %v4211_v0  ;;  %3592 = vmatpush1.bf16.msra.mxu1 %v4213_v1  ;;  %v4324_v0 = vcombine.high %v411_v48, %v419_v49 }
 0x16c   :  { %3511 = vmatprep.subr.bf16.mxu0 %v4228_v2  ;;  %3593 = vmatprep.subr.bf16.mxu1 %v4230_v4  ;;  %v4326_v4 = vcombine.high %v412_v52, %v420_v53 }
 0x16d   :  { %3541 = vmatprep.mubr.bf16.mxu0 %v4646_v29  ;;  %3623 = vmatprep.mubr.bf16.mxu1 %v4646_v29 }
 0x16f   :  { %3512 = vmatpush1.bf16.msra.mxu0 %v4227_v9  ;;  %3594 = vmatpush1.bf16.msra.mxu1 %v4229_v10  ;;  %v436_v9 = vld [vmem:[#allocation5 + $0xc68] sm:$0xff]  ;;  %v4323_v10 = vcombine.low %v411_v48, %v419_v49  ;;  %v507_v49 = vld [vmem:[#allocation5 + $0xea0] sm:$0xff] }
 0x170   :  { %3513 = vmatprep.subr.bf16.mxu0 %v4244_v11  ;;  %3595 = vmatprep.subr.bf16.mxu1 %v4246_v12  ;;  %v4325_v12 = vcombine.low %v412_v52, %v420_v53  ;;  %v4342_v14 = vcombine.high %v428_v8, %v436_v9  ;;  %v516_v52 = vld [vmem:[#allocation5 + $0xee8] sm:$0xff]  ;;  %v4403_v53 = vcombine.low %v491_v41, %v499_v42 }
 0x173   :  { %3514 = vmatpush1.bf16.msra.mxu0 %v4243_v17  ;;  %3596 = vmatpush1.bf16.msra.mxu1 %v4245_v18  ;;  %v444_v17 = vld [vmem:[#allocation5 + $0xca8] sm:$0xff] }
 0x174   :  { %3515 = vmatprep.subr.bf16.mxu0 %v4260_v19  ;;  %3597 = vmatprep.subr.bf16.mxu1 %v4262_v21  ;;  %v452_v18 = vld [vmem:[#allocation5 + $0xce8] sm:$0xff]  ;;  %v4339_v19 = vcombine.low %v427_v5, %v435_v6  ;;  %v4341_v21 = vcombine.low %v428_v8, %v436_v9  ;;  %v539_v5 = vld [vmem:[#allocation5 + $0xfa0] sm:$0xff] }
 0x175   :  { %v4358_v23 = vcombine.high %v444_v17, %v452_v18  ;;  %v547_v6 = vld [vmem:[#allocation5 + $0xfe0] sm:$0xff]  ;;  %v540_v8 = vld [vmem:[#allocation5 + $0xfa8] sm:$0xff] }
 0x176   :  { %v548_v9 = vld [vmem:[#allocation5 + $0xfe8] sm:$0xff] }
 0x177   :  { %3516 = vmatpush1.bf16.msra.mxu0 %v4259_v26  ;;  %3598 = vmatpush1.bf16.msra.mxu1 %v4261_v27  ;;  %v460_v26 = vld [vmem:[#allocation5 + $0xd28] sm:$0xff] }
 0x178   :  { %3517 = vmatprep.subr.bf16.mxu0 %v4276_v28  ;;  %3599 = vmatprep.subr.bf16.mxu1 %v4278_v30  ;;  %v468_v27 = vld [vmem:[#allocation5 + $0xd68] sm:$0xff]  ;;  %v4355_v28 = vcombine.low %v443_v15, %v451_v16  ;;  %v4357_v30 = vcombine.low %v444_v17, %v452_v18  ;;  %v45_v15 = vld [vmem:[#allocation5 + $0x30] sm:$0xff]  ;;  %v46_v17 = vld [vmem:[#allocation5 + $0x38] sm:$0xff] }
 0x179   :  { %v4374_v32 = vcombine.high %v460_v26, %v468_v27  ;;  %v53_v16 = vld [vmem:[#allocation5 + $0x70] sm:$0xff]  ;;  %v54_v18 = vld [vmem:[#allocation5 + $0x78] sm:$0xff] }
 0x17b   :  { %3518 = vmatpush1.bf16.msra.mxu0 %v4275_v35  ;;  %3600 = vmatpush1.bf16.msra.mxu1 %v4277_v36  ;;  %v476_v35 = vld [vmem:[#allocation5 + $0xda8] sm:$0xff] }
 0x17c   :  { %3519 = vmatprep.subr.bf16.mxu0 %v4292_v37  ;;  %3601 = vmatprep.subr.bf16.mxu1 %v4294_v38  ;;  %v484_v36 = vld [vmem:[#allocation5 + $0xde8] sm:$0xff]  ;;  %v4371_v37 = vcombine.low %v459_v24, %v467_v25  ;;  %v4373_v38 = vcombine.low %v460_v26, %v468_v27  ;;  %v61_v24 = vld [vmem:[#allocation5 + $0xb0] sm:$0xff]  ;;  %v62_v26 = vld [vmem:[#allocation5 + $0xb8] sm:$0xff] }
 0x17d   :  { %v3215_v46 = vpop.f32.mrb[0].mxu0  ;;  %v3297_v50 = vpop.f32.mrb[0].mxu1  ;;  %v4390_v40 = vcombine.high %v476_v35, %v484_v36  ;;  %v69_v25 = vld [vmem:[#allocation5 + $0xf0] sm:$0xff]  ;;  %v70_v27 = vld [vmem:[#allocation5 + $0xf8] sm:$0xff] }
 0x17e   :  { %v3217_v51 = vpop.f32.mrb[1].mxu0  ;;  %v3299_v55 = vpop.f32.mrb[1].mxu1 }
 0x17f   :  { %v4459_v54 = vpack.c.bf16 %v3217_v51, %v3215_v46  ;;  %v3219_v57 = vpop.f32.mrb[2].mxu0  ;;  %3520 = vmatpush1.bf16.msra.mxu0 %v4291_v43  ;;  %v4460_v60 = vpack.c.bf16 %v3299_v55, %v3297_v50  ;;  %v3301_v61 = vpop.f32.mrb[2].mxu1  ;;  %3602 = vmatpush1.bf16.msra.mxu1 %v4293_v44  ;;  %v492_v43 = vld [vmem:[#allocation5 + $0xe28] sm:$0xff]  ;;  %v4389_v46 = vcombine.low %v476_v35, %v484_v36  ;;  %v515_v50 = vld [vmem:[#allocation5 + $0xee0] sm:$0xff]  ;;  %v78_v35 = vld [vmem:[#allocation5 + $0x138] sm:$0xff] }
 0x180   :  { %v3220_v62 = vpop.f32.mrb[3].mxu0  ;;  %3521 = vmatprep.subr.bf16.mxu0 %v4308_v45  ;;  %v3302_v2 = vpop.f32.mrb[3].mxu1  ;;  %3603 = vmatprep.subr.bf16.mxu1 %v4310_v47  ;;  %v500_v44 = vld [vmem:[#allocation5 + $0xe68] sm:$0xff]  ;;  %v4387_v45 = vcombine.low %v475_v33, %v483_v34  ;;  %v4404_v47 = vcombine.high %v491_v41, %v499_v42  ;;  %v4420_v55 = vcombine.high %v507_v49, %v515_v50  ;;  %v77_v33 = vld [vmem:[#allocation5 + $0x130] sm:$0xff]  ;;  %v86_v36 = vld [vmem:[#allocation5 + $0x178] sm:$0xff] }
 0x181   :  { %v4673_v1 = vrot.slane %v4459_v54, %v4629_v56  ;;  %v4676_v7 = vrot.slane %v4460_v60, %v4629_v56  ;;  %v4406_v48 = vcombine.high %v492_v43, %v500_v44  ;;  %v508_v51 = vld [vmem:[#allocation5 + $0xea8] sm:$0xff]  ;;  %v4405_v54 = vcombine.low %v492_v43, %v500_v44  ;;  %v531_v60 = vld [vmem:[#allocation5 + $0xf60] sm:$0xff]  ;;  %v85_v34 = vld [vmem:[#allocation5 + $0x170] sm:$0xff] }
 0x182   :  { %v4422_v57 = vcombine.high %v508_v51, %v516_v52  ;;  %v524_v61 = vld [vmem:[#allocation5 + $0xf28] sm:$0xff]  ;;  %v93_v41 = vld [vmem:[#allocation5 + $0x1b0] sm:$0xff]  ;;  %v94_v43 = vld [vmem:[#allocation5 + $0x1b8] sm:$0xff] }
 0x183   :  { %3522 = vmatpush1.bf16.msra.mxu0 %v4307_v58  ;;  %v3860_v11 = vcombine.low %v4673_v1, %v4676_v7  ;;  %3604 = vmatpush1.bf16.msra.mxu1 %v4309_v63  ;;  %v523_v58 = vld [vmem:[#allocation5 + $0xf20] sm:$0xff]  ;;  %v532_v62 = vld [vmem:[#allocation5 + $0xf68] sm:$0xff]  ;;  %v4419_v63 = vcombine.low %v507_v49, %v515_v50  ;;  %v101_v42 = vld [vmem:[#allocation5 + $0x1f0] sm:$0xff] }
 0x184   :  { %3523 = vmatprep.subr.bf16.mxu0 %v4324_v0  ;;  %3605 = vmatprep.subr.bf16.mxu1 %v4326_v4  ;;  %v4421_v0 = vcombine.low %v508_v51, %v516_v52  ;;  %v4436_v2 = vcombine.high %v523_v58, %v531_v60  ;;  %v4438_v4 = vcombine.high %v524_v61, %v532_v62  ;;  %v102_v44 = vld [vmem:[#allocation5 + $0x1f8] sm:$0xff]  ;;  %v109_v49 = vld [vmem:[#allocation5 + $0x230] sm:$0xff] }
 0x185   :  { %v117_v50 = vld [vmem:[#allocation5 + $0x270] sm:$0xff]  ;;  %v110_v51 = vld [vmem:[#allocation5 + $0x238] sm:$0xff] }
 0x186   :  { %v118_v52 = vld [vmem:[#allocation5 + $0x278] sm:$0xff] }
 0x187   :  { %3524 = vmatpush1.bf16.msra.mxu0 %v4323_v10  ;;  %3606 = vmatpush1.bf16.msra.mxu1 %v4325_v12  ;;  %v4435_v10 = vcombine.low %v523_v58, %v531_v60  ;;  %v4437_v12 = vcombine.low %v524_v61, %v532_v62  ;;  %v133_v58 = vld [vmem:[#allocation5 + $0x2f0] sm:$0xff]  ;;  %v126_v60 = vld [vmem:[#allocation5 + $0x2b8] sm:$0xff]  ;;  %v4023_v62 = vcombine.low %v109_v49, %v117_v50 }
 0x188   :  { %3525 = vmatprep.subr.bf16.mxu0 %v4340_v13  ;;  %3607 = vmatprep.subr.bf16.mxu1 %v4342_v14  ;;  %v4452_v13 = vcombine.high %v539_v5, %v547_v6  ;;  %v4454_v14 = vcombine.high %v540_v8, %v548_v9  ;;  %v134_v61 = vld [vmem:[#allocation5 + $0x2f8] sm:$0xff] }
 0x18b   :  { %3526 = vmatpush1.bf16.msra.mxu0 %v4339_v19  ;;  %3608 = vmatpush1.bf16.msra.mxu1 %v4341_v21  ;;  %v4451_v19 = vcombine.low %v539_v5, %v547_v6  ;;  %v4453_v21 = vcombine.low %v540_v8, %v548_v9  ;;  %v149_v5 = vld [vmem:[#allocation5 + $0x370] sm:$0xff]  ;;  %v142_v6 = vld [vmem:[#allocation5 + $0x338] sm:$0xff] }
 0x18c   :  { %3527 = vmatprep.subr.bf16.mxu0 %v4356_v22  ;;  %3609 = vmatprep.subr.bf16.mxu1 %v4358_v23  ;;  %v3960_v22 = vcombine.high %v45_v15, %v53_v16  ;;  %v3962_v23 = vcombine.high %v46_v17, %v54_v18  ;;  %v150_v8 = vld [vmem:[#allocation5 + $0x378] sm:$0xff] }
 0x18f   :  { %3528 = vmatpush1.bf16.msra.mxu0 %v4355_v28  ;;  %3610 = vmatpush1.bf16.msra.mxu1 %v4357_v30  ;;  %v3959_v28 = vcombine.low %v45_v15, %v53_v16  ;;  %v3961_v30 = vcombine.low %v46_v17, %v54_v18  ;;  %v165_v15 = vld [vmem:[#allocation5 + $0x3f0] sm:$0xff]  ;;  %v158_v16 = vld [vmem:[#allocation5 + $0x3b8] sm:$0xff] }
 0x190   :  { %3529 = vmatprep.subr.bf16.mxu0 %v4372_v31  ;;  %3611 = vmatprep.subr.bf16.mxu1 %v4374_v32  ;;  %v3976_v31 = vcombine.high %v61_v24, %v69_v25  ;;  %v3978_v32 = vcombine.high %v62_v26, %v70_v27  ;;  %v166_v17 = vld [vmem:[#allocation5 + $0x3f8] sm:$0xff] }
 0x193   :  { %3530 = vmatpush1.bf16.msra.mxu0 %v4371_v37  ;;  %3612 = vmatpush1.bf16.msra.mxu1 %v4373_v38  ;;  %v3975_v37 = vcombine.low %v61_v24, %v69_v25  ;;  %v3977_v38 = vcombine.low %v62_v26, %v70_v27  ;;  %v181_v24 = vld [vmem:[#allocation5 + $0x470] sm:$0xff]  ;;  %v174_v25 = vld [vmem:[#allocation5 + $0x438] sm:$0xff] }
 0x194   :  { %3531 = vmatprep.subr.bf16.mxu0 %v4388_v39  ;;  %3613 = vmatprep.subr.bf16.mxu1 %v4390_v40  ;;  %v3992_v39 = vcombine.high %v77_v33, %v85_v34  ;;  %v3994_v40 = vcombine.high %v78_v35, %v86_v36  ;;  %v182_v26 = vld [vmem:[#allocation5 + $0x478] sm:$0xff] }
 0x197   :  { %3532 = vmatpush1.bf16.msra.mxu0 %v4387_v45  ;;  %3614 = vmatpush1.bf16.msra.mxu1 %v4389_v46  ;;  %v3991_v45 = vcombine.low %v77_v33, %v85_v34  ;;  %v3993_v46 = vcombine.low %v78_v35, %v86_v36  ;;  %v197_v33 = vld [vmem:[#allocation5 + $0x4f0] sm:$0xff]  ;;  %v190_v34 = vld [vmem:[#allocation5 + $0x4b8] sm:$0xff] }
 0x198   :  { %3533 = vmatprep.subr.bf16.mxu0 %v4404_v47  ;;  %3615 = vmatprep.subr.bf16.mxu1 %v4406_v48  ;;  %v4008_v47 = vcombine.high %v93_v41, %v101_v42  ;;  %v4010_v48 = vcombine.high %v94_v43, %v102_v44  ;;  %v198_v35 = vld [vmem:[#allocation5 + $0x4f8] sm:$0xff] }
 0x19b   :  { %3534 = vmatpush1.bf16.msra.mxu0 %v4403_v53  ;;  %3616 = vmatpush1.bf16.msra.mxu1 %v4405_v54  ;;  %v4007_v53 = vcombine.low %v93_v41, %v101_v42  ;;  %v4009_v54 = vcombine.low %v94_v43, %v102_v44  ;;  %v213_v41 = vld [vmem:[#allocation5 + $0x570] sm:$0xff]  ;;  %v206_v42 = vld [vmem:[#allocation5 + $0x538] sm:$0xff] }
 0x19c   :  { %3535 = vmatprep.subr.bf16.mxu0 %v4420_v55  ;;  %3617 = vmatprep.subr.bf16.mxu1 %v4422_v57  ;;  %v4024_v55 = vcombine.high %v109_v49, %v117_v50  ;;  %v125_v57 = vld [vmem:[#allocation5 + $0x2b0] sm:$0xff]  ;;  %v214_v43 = vld [vmem:[#allocation5 + $0x578] sm:$0xff] }
 0x19d   :  { %v4039_v9 = vcombine.low %v125_v57, %v133_v58  ;;  %v229_v49 = vld [vmem:[#allocation5 + $0x5f0] sm:$0xff]  ;;  %v222_v50 = vld [vmem:[#allocation5 + $0x5b8] sm:$0xff] }
 0x19f   :  { %3536 = vmatpush1.bf16.msra.mxu0 %v4419_v63  ;;  %3618 = vmatpush1.bf16.msra.mxu1 %v4421_v0  ;;  %v4025_v63 = vcombine.low %v110_v51, %v118_v52  ;;  %v4040_v0 = vcombine.high %v125_v57, %v133_v58  ;;  %v245_v57 = vld [vmem:[#allocation5 + $0x670] sm:$0xff]  ;;  %v238_v58 = vld [vmem:[#allocation5 + $0x638] sm:$0xff] }
 0x1a0   :  { %3537 = vmatprep.subr.bf16.mxu0 %v4436_v2  ;;  %3619 = vmatprep.subr.bf16.mxu1 %v4438_v4  ;;  %v4042_v2 = vcombine.high %v126_v60, %v134_v61  ;;  %v141_v4 = vld [vmem:[#allocation5 + $0x330] sm:$0xff] }
 0x1a1   :  { %v4055_v18 = vcombine.low %v141_v4, %v149_v5 }
 0x1a3   :  { %3538 = vmatpush1.bf16.msra.mxu0 %v4435_v10  ;;  %3620 = vmatpush1.bf16.msra.mxu1 %v4437_v12  ;;  %v4041_v10 = vcombine.low %v126_v60, %v134_v61  ;;  %v4056_v12 = vcombine.high %v141_v4, %v149_v5  ;;  %v246_v60 = vld [vmem:[#allocation5 + $0x678] sm:$0xff]  ;;  %v261_v4 = vld [vmem:[#allocation5 + $0x6f0] sm:$0xff] }
 0x1a4   :  { %3539 = vmatprep.subr.bf16.mxu0 %v4452_v13  ;;  %3621 = vmatprep.subr.bf16.mxu1 %v4454_v14  ;;  %v4058_v13 = vcombine.high %v142_v6, %v150_v8  ;;  %v157_v14 = vld [vmem:[#allocation5 + $0x3b0] sm:$0xff]  ;;  %v254_v5 = vld [vmem:[#allocation5 + $0x6b8] sm:$0xff] }
 0x1a5   :  { %v4071_v27 = vcombine.low %v157_v14, %v165_v15 }
 0x1a7   :  { %3540 = vmatpush1.bf16.msra.mxu0 %v4451_v19  ;;  %3622 = vmatpush1.bf16.msra.mxu1 %v4453_v21  ;;  %v4057_v19 = vcombine.low %v142_v6, %v150_v8  ;;  %v4072_v21 = vcombine.high %v157_v14, %v165_v15  ;;  %v262_v6 = vld [vmem:[#allocation5 + $0x6f8] sm:$0xff]  ;;  %v277_v14 = vld [vmem:[#allocation5 + $0x770] sm:$0xff] }
 0x1a8   :  { %3632 = vmatprep.subr.bf16.mxu0 %v3960_v22  ;;  %3714 = vmatprep.subr.bf16.mxu1 %v3962_v23  ;;  %v4074_v22 = vcombine.high %v158_v16, %v166_v17  ;;  %v173_v23 = vld [vmem:[#allocation5 + $0x430] sm:$0xff]  ;;  %v270_v15 = vld [vmem:[#allocation5 + $0x738] sm:$0xff] }
 0x1a9   :  { %v4087_v36 = vcombine.low %v173_v23, %v181_v24 }
 0x1aa   :  { %3542 = vmatmul.mubr.bf16.vlgmr.msra.gmra.mrb[8].mxu0 %v4654_v59  ;;  %3624 = vmatmul.mubr.bf16.vlgmr.msra.gmra.mrb[8].mxu1 %v4654_v59 }
 0x1ab   :  { %3633 = vmatpush1.bf16.msra.mxu0 %v3959_v28  ;;  %3715 = vmatpush1.bf16.msra.mxu1 %v3961_v30  ;;  %v4073_v28 = vcombine.low %v158_v16, %v166_v17  ;;  %v4088_v30 = vcombine.high %v173_v23, %v181_v24  ;;  %v278_v16 = vld [vmem:[#allocation5 + $0x778] sm:$0xff]  ;;  %v293_v23 = vld [vmem:[#allocation5 + $0x7f0] sm:$0xff] }
 0x1ac   :  { %3634 = vmatprep.subr.bf16.mxu0 %v3976_v31  ;;  %3716 = vmatprep.subr.bf16.mxu1 %v3978_v32  ;;  %v4090_v31 = vcombine.high %v174_v25, %v182_v26  ;;  %v189_v32 = vld [vmem:[#allocation5 + $0x4b0] sm:$0xff]  ;;  %v286_v24 = vld [vmem:[#allocation5 + $0x7b8] sm:$0xff] }
 0x1ad   :  { %3664 = vmatprep.mubr.bf16.mxu0 %v4636_v3  ;;  %3746 = vmatprep.mubr.bf16.mxu1 %v4636_v3  ;;  %v4026_v3 = vcombine.high %v110_v51, %v118_v52  ;;  %v4103_v44 = vcombine.low %v189_v32, %v197_v33  ;;  %v230_v51 = vld [vmem:[#allocation5 + $0x5f8] sm:$0xff] }
 0x1af   :  { %3635 = vmatpush1.bf16.msra.mxu0 %v3975_v37  ;;  %3717 = vmatpush1.bf16.msra.mxu1 %v3977_v38  ;;  %v4089_v37 = vcombine.low %v174_v25, %v182_v26  ;;  %v4104_v38 = vcombine.high %v189_v32, %v197_v33  ;;  %v294_v25 = vld [vmem:[#allocation5 + $0x7f8] sm:$0xff]  ;;  %v309_v32 = vld [vmem:[#allocation5 + $0x870] sm:$0xff] }
 0x1b0   :  { %3636 = vmatprep.subr.bf16.mxu0 %v3992_v39  ;;  %3718 = vmatprep.subr.bf16.mxu1 %v3994_v40  ;;  %v4106_v39 = vcombine.high %v190_v34, %v198_v35  ;;  %v205_v40 = vld [vmem:[#allocation5 + $0x530] sm:$0xff]  ;;  %v302_v33 = vld [vmem:[#allocation5 + $0x838] sm:$0xff] }
 0x1b1   :  { %v4119_v52 = vcombine.low %v205_v40, %v213_v41 }
 0x1b3   :  { %3637 = vmatpush1.bf16.msra.mxu0 %v3991_v45  ;;  %3719 = vmatpush1.bf16.msra.mxu1 %v3993_v46  ;;  %v4105_v45 = vcombine.low %v190_v34, %v198_v35  ;;  %v4120_v46 = vcombine.high %v205_v40, %v213_v41  ;;  %v310_v34 = vld [vmem:[#allocation5 + $0x878] sm:$0xff]  ;;  %v325_v40 = vld [vmem:[#allocation5 + $0x8f0] sm:$0xff] }
 0x1b4   :  { %3638 = vmatprep.subr.bf16.mxu0 %v4008_v47  ;;  %3720 = vmatprep.subr.bf16.mxu1 %v4010_v48  ;;  %v4122_v47 = vcombine.high %v206_v42, %v214_v43  ;;  %v221_v48 = vld [vmem:[#allocation5 + $0x5b0] sm:$0xff]  ;;  %v318_v41 = vld [vmem:[#allocation5 + $0x8b8] sm:$0xff] }
 0x1b5   :  { %v4135_v61 = vcombine.low %v221_v48, %v229_v49 }
 0x1b7   :  { %3639 = vmatpush1.bf16.msra.mxu0 %v4007_v53  ;;  %3721 = vmatpush1.bf16.msra.mxu1 %v4009_v54  ;;  %v4121_v53 = vcombine.low %v206_v42, %v214_v43  ;;  %v4136_v54 = vcombine.high %v221_v48, %v229_v49  ;;  %v326_v42 = vld [vmem:[#allocation5 + $0x8f8] sm:$0xff]  ;;  %v341_v48 = vld [vmem:[#allocation5 + $0x970] sm:$0xff] }
 0x1b8   :  { %3640 = vmatprep.subr.bf16.mxu0 %v4024_v55  ;;  %3722 = vmatprep.subr.bf16.mxu1 %v4026_v3  ;;  %v4138_v55 = vcombine.high %v222_v50, %v230_v51  ;;  %v237_v3 = vld [vmem:[#allocation5 + $0x630] sm:$0xff]  ;;  %v334_v49 = vld [vmem:[#allocation5 + $0x938] sm:$0xff] }
 0x1b9   :  { %v4151_v8 = vcombine.low %v237_v3, %v245_v57 }
 0x1bb   :  { %3641 = vmatpush1.bf16.msra.mxu0 %v4023_v62  ;;  %3723 = vmatpush1.bf16.msra.mxu1 %v4025_v63  ;;  %v4137_v62 = vcombine.low %v222_v50, %v230_v51  ;;  %v4152_v63 = vcombine.high %v237_v3, %v245_v57  ;;  %v342_v50 = vld [vmem:[#allocation5 + $0x978] sm:$0xff]  ;;  %v357_v3 = vld [vmem:[#allocation5 + $0x9f0] sm:$0xff] }
 0x1bc   :  { %3642 = vmatprep.subr.bf16.mxu0 %v4040_v0  ;;  %3724 = vmatprep.subr.bf16.mxu1 %v4042_v2  ;;  %v4154_v0 = vcombine.high %v238_v58, %v246_v60  ;;  %v253_v2 = vld [vmem:[#allocation5 + $0x6b0] sm:$0xff]  ;;  %v350_v57 = vld [vmem:[#allocation5 + $0x9b8] sm:$0xff] }
 0x1bd   :  { %v4167_v17 = vcombine.low %v253_v2, %v261_v4 }
 0x1bf   :  { %3643 = vmatpush1.bf16.msra.mxu0 %v4039_v9  ;;  %3725 = vmatpush1.bf16.msra.mxu1 %v4041_v10  ;;  %v4153_v9 = vcombine.low %v238_v58, %v246_v60  ;;  %v4168_v10 = vcombine.high %v253_v2, %v261_v4  ;;  %v358_v58 = vld [vmem:[#allocation5 + $0x9f8] sm:$0xff] }
 0x1c0   :  { %3644 = vmatprep.subr.bf16.mxu0 %v4056_v12  ;;  %3726 = vmatprep.subr.bf16.mxu1 %v4058_v13  ;;  %v4170_v12 = vcombine.high %v254_v5, %v262_v6  ;;  %v269_v13 = vld [vmem:[#allocation5 + $0x730] sm:$0xff]  ;;  %v366_v2 = vld [vmem:[#allocation5 + $0xa38] sm:$0xff] }
 0x1c1   :  { %v4183_v26 = vcombine.low %v269_v13, %v277_v14  ;;  %v374_v4 = vld [vmem:[#allocation5 + $0xa78] sm:$0xff] }
 0x1c3   :  { %3645 = vmatpush1.bf16.msra.mxu0 %v4055_v18  ;;  %3727 = vmatpush1.bf16.msra.mxu1 %v4057_v19  ;;  %v4169_v18 = vcombine.low %v254_v5, %v262_v6  ;;  %v4184_v19 = vcombine.high %v269_v13, %v277_v14  ;;  %v4265_v6 = vcombine.low %v350_v57, %v358_v58  ;;  %v390_v13 = vld [vmem:[#allocation5 + $0xaf8] sm:$0xff] }
 0x1c4   :  { %3646 = vmatprep.subr.bf16.mxu0 %v4072_v21  ;;  %3728 = vmatprep.subr.bf16.mxu1 %v4074_v22  ;;  %v4186_v21 = vcombine.high %v270_v15, %v278_v16  ;;  %v285_v22 = vld [vmem:[#allocation5 + $0x7b0] sm:$0xff] }
 0x1c5   :  { %v4199_v35 = vcombine.low %v285_v22, %v293_v23 }
 0x1c7   :  { %3647 = vmatpush1.bf16.msra.mxu0 %v4071_v27  ;;  %3729 = vmatpush1.bf16.msra.mxu1 %v4073_v28  ;;  %v4185_v27 = vcombine.low %v270_v15, %v278_v16  ;;  %v4200_v28 = vcombine.high %v285_v22, %v293_v23  ;;  %v4281_v15 = vcombine.low %v366_v2, %v374_v4  ;;  %v406_v22 = vld [vmem:[#allocation5 + $0xb78] sm:$0xff] }
 0x1c8   :  { %3648 = vmatprep.subr.bf16.mxu0 %v4088_v30  ;;  %3730 = vmatprep.subr.bf16.mxu1 %v4090_v31  ;;  %v4202_v30 = vcombine.high %v286_v24, %v294_v25  ;;  %v301_v31 = vld [vmem:[#allocation5 + $0x830] sm:$0xff] }
 0x1c9   :  { %v4215_v43 = vcombine.low %v301_v31, %v309_v32 }
 0x1cb   :  { %3649 = vmatpush1.bf16.msra.mxu0 %v4087_v36  ;;  %3731 = vmatpush1.bf16.msra.mxu1 %v4089_v37  ;;  %v4201_v36 = vcombine.low %v286_v24, %v294_v25  ;;  %v4216_v37 = vcombine.high %v301_v31, %v309_v32 }
 0x1cc   :  { %3650 = vmatprep.subr.bf16.mxu0 %v4104_v38  ;;  %3732 = vmatprep.subr.bf16.mxu1 %v4106_v39  ;;  %v4218_v38 = vcombine.high %v302_v33, %v310_v34  ;;  %v317_v39 = vld [vmem:[#allocation5 + $0x8b0] sm:$0xff] }
 0x1cd   :  { %v4231_v51 = vcombine.low %v317_v39, %v325_v40 }
 0x1cf   :  { %3651 = vmatpush1.bf16.msra.mxu0 %v4103_v44  ;;  %3733 = vmatpush1.bf16.msra.mxu1 %v4105_v45  ;;  %v4217_v44 = vcombine.low %v302_v33, %v310_v34  ;;  %v4232_v45 = vcombine.high %v317_v39, %v325_v40  ;;  %v414_v33 = vld [vmem:[#allocation5 + $0xbb8] sm:$0xff] }
 0x1d0   :  { %3652 = vmatprep.subr.bf16.mxu0 %v4120_v46  ;;  %3734 = vmatprep.subr.bf16.mxu1 %v4122_v47  ;;  %v4234_v46 = vcombine.high %v318_v41, %v326_v42  ;;  %v333_v47 = vld [vmem:[#allocation5 + $0x930] sm:$0xff]  ;;  %v422_v34 = vld [vmem:[#allocation5 + $0xbf8] sm:$0xff] }
 0x1d1   :  { %v4247_v60 = vcombine.low %v333_v47, %v341_v48 }
 0x1d3   :  { %3653 = vmatpush1.bf16.msra.mxu0 %v4119_v52  ;;  %3735 = vmatpush1.bf16.msra.mxu1 %v4121_v53  ;;  %v4233_v52 = vcombine.low %v318_v41, %v326_v42  ;;  %v4248_v53 = vcombine.high %v333_v47, %v341_v48  ;;  %v429_v47 = vld [vmem:[#allocation5 + $0xc30] sm:$0xff] }
 0x1d4   :  { %3654 = vmatprep.subr.bf16.mxu0 %v4136_v54  ;;  %3736 = vmatprep.subr.bf16.mxu1 %v4138_v55  ;;  %v4250_v54 = vcombine.high %v334_v49, %v342_v50  ;;  %v349_v55 = vld [vmem:[#allocation5 + $0x9b0] sm:$0xff] }
 0x1d5   :  { %v4263_v5 = vcombine.low %v349_v55, %v357_v3  ;;  %v437_v48 = vld [vmem:[#allocation5 + $0xc70] sm:$0xff] }
 0x1d7   :  { %3655 = vmatpush1.bf16.msra.mxu0 %v4135_v61  ;;  %3737 = vmatpush1.bf16.msra.mxu1 %v4137_v62  ;;  %v4264_v61 = vcombine.high %v349_v55, %v357_v3  ;;  %v4266_v62 = vcombine.high %v350_v57, %v358_v58  ;;  %v4344_v55 = vcombine.high %v429_v47, %v437_v48  ;;  %v445_v57 = vld [vmem:[#allocation5 + $0xcb0] sm:$0xff] }
 0x1d8   :  { %3656 = vmatprep.subr.bf16.mxu0 %v4152_v63  ;;  %3738 = vmatprep.subr.bf16.mxu1 %v4154_v0  ;;  %v365_v63 = vld [vmem:[#allocation5 + $0xa30] sm:$0xff] }
 0x1d9   :  { %v373_v0 = vld [vmem:[#allocation5 + $0xa70] sm:$0xff] }
 0x1da   :  { %v4279_v14 = vcombine.low %v365_v63, %v373_v0  ;;  %v453_v58 = vld [vmem:[#allocation5 + $0xcf0] sm:$0xff] }
 0x1db   :  { %3657 = vmatpush1.bf16.msra.mxu0 %v4151_v8  ;;  %3739 = vmatpush1.bf16.msra.mxu1 %v4153_v9  ;;  %v4280_v8 = vcombine.high %v365_v63, %v373_v0  ;;  %v381_v9 = vld [vmem:[#allocation5 + $0xab0] sm:$0xff]  ;;  %v4343_v63 = vcombine.low %v429_v47, %v437_v48  ;;  %v4359_v1 = vcombine.low %v445_v57, %v453_v58  ;;  %v542_v48 = vld [vmem:[#allocation5 + $0xfb8] sm:$0xff] }
 0x1dc   :  { %3658 = vmatprep.subr.bf16.mxu0 %v4168_v10  ;;  %3740 = vmatprep.subr.bf16.mxu1 %v4170_v12  ;;  %v389_v10 = vld [vmem:[#allocation5 + $0xaf0] sm:$0xff]  ;;  %v382_v12 = vld [vmem:[#allocation5 + $0xab8] sm:$0xff] }
 0x1dd   :  { %v4296_v16 = vcombine.high %v381_v9, %v389_v10  ;;  %v4295_v23 = vcombine.low %v381_v9, %v389_v10  ;;  %v4297_v24 = vcombine.low %v382_v12, %v390_v13  ;;  %v470_v9 = vld [vmem:[#allocation5 + $0xd78] sm:$0xff]  ;;  %v549_v47 = vld [vmem:[#allocation5 + $0xff0] sm:$0xff] }
 0x1df   :  { %3659 = vmatpush1.bf16.msra.mxu0 %v4167_v17  ;;  %3741 = vmatpush1.bf16.msra.mxu1 %v4169_v18  ;;  %v4298_v17 = vcombine.high %v382_v12, %v390_v13  ;;  %v397_v18 = vld [vmem:[#allocation5 + $0xb30] sm:$0xff] }
 0x1e0   :  { %3660 = vmatprep.subr.bf16.mxu0 %v4184_v19  ;;  %3742 = vmatprep.subr.bf16.mxu1 %v4186_v21  ;;  %v405_v19 = vld [vmem:[#allocation5 + $0xb70] sm:$0xff]  ;;  %v398_v21 = vld [vmem:[#allocation5 + $0xb38] sm:$0xff] }
 0x1e1   :  { %v4312_v25 = vcombine.high %v397_v18, %v405_v19  ;;  %v4313_v42 = vcombine.low %v398_v21, %v406_v22  ;;  %v477_v12 = vld [vmem:[#allocation5 + $0xdb0] sm:$0xff] }
 0x1e2   :  { %v485_v13 = vld [vmem:[#allocation5 + $0xdf0] sm:$0xff] }
 0x1e3   :  { %3661 = vmatpush1.bf16.msra.mxu0 %v4183_v26  ;;  %3743 = vmatpush1.bf16.msra.mxu1 %v4185_v27  ;;  %v4314_v27 = vcombine.high %v398_v21, %v406_v22  ;;  %v493_v21 = vld [vmem:[#allocation5 + $0xe30] sm:$0xff] }
 0x1e4   :  { %3662 = vmatprep.subr.bf16.mxu0 %v4200_v28  ;;  %3744 = vmatprep.subr.bf16.mxu1 %v4202_v30  ;;  %v413_v28 = vld [vmem:[#allocation5 + $0xbb0] sm:$0xff] }
 0x1e5   :  { %v421_v30 = vld [vmem:[#allocation5 + $0xbf0] sm:$0xff] }
 0x1e6   :  { %v501_v22 = vld [vmem:[#allocation5 + $0xe70] sm:$0xff] }
 0x1e7   :  { %3663 = vmatpush1.bf16.msra.mxu0 %v4199_v35  ;;  %3745 = vmatpush1.bf16.msra.mxu1 %v4201_v36 }
 0x1e8   :  { %3673 = vmatprep.subr.bf16.mxu0 %v4216_v37  ;;  %3755 = vmatprep.subr.bf16.mxu1 %v4218_v38  ;;  %v4311_v38 = vcombine.low %v397_v18, %v405_v19  ;;  %v4392_v18 = vcombine.high %v477_v12, %v485_v13 }
 0x1ea   :  { %3665 = vmatmul.mubr.bf16.vlgmr.msra.gmra.mrb[12].mxu0 %v4642_v20  ;;  %3747 = vmatmul.mubr.bf16.vlgmr.msra.gmra.mrb[12].mxu1 %v4642_v20  ;;  %v4249_v20 = vcombine.low %v334_v49, %v342_v50  ;;  %v430_v50 = vld [vmem:[#allocation5 + $0xc38] sm:$0xff] }
 0x1eb   :  { %3674 = vmatpush1.bf16.msra.mxu0 %v4215_v43  ;;  %3756 = vmatpush1.bf16.msra.mxu1 %v4217_v44  ;;  %v4328_v43 = vcombine.high %v413_v28, %v421_v30 }
 0x1ec   :  { %3675 = vmatprep.subr.bf16.mxu0 %v4232_v45  ;;  %3757 = vmatprep.subr.bf16.mxu1 %v4234_v46  ;;  %v4330_v46 = vcombine.high %v414_v33, %v422_v34 }
 0x1ed   :  { %3705 = vmatprep.mubr.bf16.mxu0 %v4646_v29  ;;  %3787 = vmatprep.mubr.bf16.mxu1 %v4646_v29  ;;  %v4282_v29 = vcombine.high %v366_v2, %v374_v4  ;;  %v4360_v2 = vcombine.high %v445_v57, %v453_v58 }
 0x1ef   :  { %3676 = vmatpush1.bf16.msra.mxu0 %v4231_v51  ;;  %3758 = vmatpush1.bf16.msra.mxu1 %v4233_v52  ;;  %v438_v51 = vld [vmem:[#allocation5 + $0xc78] sm:$0xff]  ;;  %v4327_v52 = vcombine.low %v413_v28, %v421_v30  ;;  %v509_v30 = vld [vmem:[#allocation5 + $0xeb0] sm:$0xff] }
 0x1f0   :  { %3677 = vmatprep.subr.bf16.mxu0 %v4248_v53  ;;  %3759 = vmatprep.subr.bf16.mxu1 %v4250_v54  ;;  %v4329_v54 = vcombine.low %v414_v33, %v422_v34  ;;  %v4346_v3 = vcombine.high %v430_v50, %v438_v51  ;;  %v4345_v0 = vcombine.low %v430_v50, %v438_v51  ;;  %v518_v33 = vld [vmem:[#allocation5 + $0xef8] sm:$0xff] }
 0x1f1   :  { %v4407_v34 = vcombine.low %v493_v21, %v501_v22 }
 0x1f3   :  { %3678 = vmatpush1.bf16.msra.mxu0 %v4247_v60  ;;  %3760 = vmatpush1.bf16.msra.mxu1 %v4249_v20  ;;  %v3868_v60 = vrot.slane %v3860_v11, %v4629_v56 }
 0x1f4   :  { %3679 = vmatprep.subr.bf16.mxu0 %v4264_v61  ;;  %3761 = vmatprep.subr.bf16.mxu1 %v4266_v62  ;;  %v446_v61 = vld [vmem:[#allocation5 + $0xcb8] sm:$0xff] }
 0x1f5   :  { %v454_v62 = vld [vmem:[#allocation5 + $0xcf8] sm:$0xff] }
 0x1f6   :  { %v4361_v7 = vcombine.low %v446_v61, %v454_v62 }
 0x1f7   :  { %3680 = vmatpush1.bf16.msra.mxu0 %v4263_v5  ;;  %3762 = vmatpush1.bf16.msra.mxu1 %v4265_v6  ;;  %v4362_v5 = vcombine.high %v446_v61, %v454_v62  ;;  %v461_v6 = vld [vmem:[#allocation5 + $0xd30] sm:$0xff] }
 0x1f8   :  { %3681 = vmatprep.subr.bf16.mxu0 %v4280_v8  ;;  %3763 = vmatprep.subr.bf16.mxu1 %v4282_v29  ;;  %v469_v8 = vld [vmem:[#allocation5 + $0xd70] sm:$0xff]  ;;  %v462_v29 = vld [vmem:[#allocation5 + $0xd38] sm:$0xff] }
 0x1f9   :  { %v4376_v11 = vcombine.high %v461_v6, %v469_v8  ;;  %v4378_v10 = vcombine.high %v462_v29, %v470_v9 }
 0x1fb   :  { %3682 = vmatpush1.bf16.msra.mxu0 %v4279_v14  ;;  %3764 = vmatpush1.bf16.msra.mxu1 %v4281_v15  ;;  %v478_v14 = vld [vmem:[#allocation5 + $0xdb8] sm:$0xff] }
 0x1fc   :  { %3683 = vmatprep.subr.bf16.mxu0 %v4296_v16  ;;  %3765 = vmatprep.subr.bf16.mxu1 %v4298_v17  ;;  %v486_v15 = vld [vmem:[#allocation5 + $0xdf8] sm:$0xff]  ;;  %v4375_v16 = vcombine.low %v461_v6, %v469_v8  ;;  %v4377_v17 = vcombine.low %v462_v29, %v470_v9 }
 0x1fd   :  { %v3379_v26 = vpop.f32.mrb[4].mxu0  ;;  %v3461_v31 = vpop.f32.mrb[4].mxu1  ;;  %v4394_v19 = vcombine.high %v478_v14, %v486_v15 }
 0x1fe   :  { %v3381_v32 = vpop.f32.mrb[5].mxu0  ;;  %v3463_v36 = vpop.f32.mrb[5].mxu1 }
 0x1ff   :  { %v4461_v35 = vpack.c.bf16 %v3381_v32, %v3379_v26  ;;  %v3383_v37 = vpop.f32.mrb[6].mxu0  ;;  %3684 = vmatpush1.bf16.msra.mxu0 %v4295_v23  ;;  %v4462_v39 = vpack.c.bf16 %v3463_v36, %v3461_v31  ;;  %v3465_v40 = vpop.f32.mrb[6].mxu1  ;;  %3766 = vmatpush1.bf16.msra.mxu1 %v4297_v24  ;;  %v494_v23 = vld [vmem:[#allocation5 + $0xe38] sm:$0xff]  ;;  %v4393_v26 = vcombine.low %v478_v14, %v486_v15  ;;  %v517_v31 = vld [vmem:[#allocation5 + $0xef0] sm:$0xff] }
 0x200   :  { %v3384_v41 = vpop.f32.mrb[7].mxu0  ;;  %3685 = vmatprep.subr.bf16.mxu0 %v4312_v25  ;;  %v3466_v45 = vpop.f32.mrb[7].mxu1  ;;  %3767 = vmatprep.subr.bf16.mxu1 %v4314_v27  ;;  %v502_v24 = vld [vmem:[#allocation5 + $0xe78] sm:$0xff]  ;;  %v4391_v25 = vcombine.low %v477_v12, %v485_v13  ;;  %v4408_v27 = vcombine.high %v493_v21, %v501_v22  ;;  %v4424_v36 = vcombine.high %v509_v30, %v517_v31 }
 0x201   :  { %v3852_v44 = vrot.slane %v4461_v35, %v4629_v56  ;;  %v3859_v49 = vrot.slane %v4462_v39, %v4629_v56  ;;  %v4410_v28 = vcombine.high %v494_v23, %v502_v24  ;;  %v510_v32 = vld [vmem:[#allocation5 + $0xeb8] sm:$0xff]  ;;  %v4409_v35 = vcombine.low %v494_v23, %v502_v24  ;;  %v533_v39 = vld [vmem:[#allocation5 + $0xf70] sm:$0xff] }
 0x202   :  { %v4426_v37 = vcombine.high %v510_v32, %v518_v33  ;;  %v526_v40 = vld [vmem:[#allocation5 + $0xf38] sm:$0xff] }
 0x203   :  { %3686 = vmatpush1.bf16.msra.mxu0 %v4311_v38  ;;  %v3861_v53 = vcombine.low %v3852_v44, %v3859_v49  ;;  %3768 = vmatpush1.bf16.msra.mxu1 %v4313_v42  ;;  %v525_v38 = vld [vmem:[#allocation5 + $0xf30] sm:$0xff]  ;;  %v534_v41 = vld [vmem:[#allocation5 + $0xf78] sm:$0xff]  ;;  %v4423_v42 = vcombine.low %v509_v30, %v517_v31 }
 0x204   :  { %3687 = vmatprep.subr.bf16.mxu0 %v4328_v43  ;;  %3769 = vmatprep.subr.bf16.mxu1 %v4330_v46  ;;  %v4425_v43 = vcombine.low %v510_v32, %v518_v33  ;;  %v4440_v44 = vcombine.high %v525_v38, %v533_v39  ;;  %v4442_v45 = vcombine.high %v526_v40, %v534_v41  ;;  %v541_v46 = vld [vmem:[#allocation5 + $0xfb0] sm:$0xff]  ;;  %v550_v49 = vld [vmem:[#allocation5 + $0xff8] sm:$0xff] }
 0x205   :  { %v3875_v20 = vrot.slane %v3861_v53, %v4629_v56  ;;  %v4439_v50 = vcombine.low %v525_v38, %v533_v39  ;;  %v4441_v51 = vcombine.low %v526_v40, %v534_v41  ;;  %v4458_v53 = vcombine.high %v542_v48, %v550_v49 }
 0x207   :  { %3688 = vmatpush1.bf16.msra.mxu0 %v4327_v52  ;;  %3770 = vmatpush1.bf16.msra.mxu1 %v4329_v54  ;;  %v3876_v4 = vcombine.low %v3868_v60, %v3875_v20  ;;  %v4456_v52 = vcombine.high %v541_v46, %v549_v47  ;;  %v4455_v54 = vcombine.low %v541_v46, %v549_v47 }
 0x208   :  { %3689 = vmatprep.subr.bf16.mxu0 %v4344_v55  ;;  %3771 = vmatprep.subr.bf16.mxu1 %v4346_v3  ;;  %v4457_v55 = vcombine.low %v542_v48, %v550_v49 }
 0x209   :  { %3928 = vst [vmem:[#allocation7] sm:$0xff] %v3876_v4 }
 0x20b   :  { %3690 = vmatpush1.bf16.msra.mxu0 %v4343_v63  ;;  %3772 = vmatpush1.bf16.msra.mxu1 %v4345_v0 }
 0x20c   :  { %3691 = vmatprep.subr.bf16.mxu0 %v4360_v2  ;;  %3773 = vmatprep.subr.bf16.mxu1 %v4362_v5 }
 0x20f   :  { %3692 = vmatpush1.bf16.msra.mxu0 %v4359_v1  ;;  %3774 = vmatpush1.bf16.msra.mxu1 %v4361_v7 }
 0x210   :  { %3693 = vmatprep.subr.bf16.mxu0 %v4376_v11  ;;  %3775 = vmatprep.subr.bf16.mxu1 %v4378_v10 }
 0x213   :  { %3694 = vmatpush1.bf16.msra.mxu0 %v4375_v16  ;;  %3776 = vmatpush1.bf16.msra.mxu1 %v4377_v17 }
 0x214   :  { %3695 = vmatprep.subr.bf16.mxu0 %v4392_v18  ;;  %3777 = vmatprep.subr.bf16.mxu1 %v4394_v19 }
 0x217   :  { %3696 = vmatpush1.bf16.msra.mxu0 %v4391_v25  ;;  %3778 = vmatpush1.bf16.msra.mxu1 %v4393_v26 }
 0x218   :  { %3697 = vmatprep.subr.bf16.mxu0 %v4408_v27  ;;  %3779 = vmatprep.subr.bf16.mxu1 %v4410_v28 }
 0x21b   :  { %3698 = vmatpush1.bf16.msra.mxu0 %v4407_v34  ;;  %3780 = vmatpush1.bf16.msra.mxu1 %v4409_v35 }
 0x21c   :  { %3699 = vmatprep.subr.bf16.mxu0 %v4424_v36  ;;  %3781 = vmatprep.subr.bf16.mxu1 %v4426_v37 }
 0x21f   :  { %3700 = vmatpush1.bf16.msra.mxu0 %v4423_v42  ;;  %3782 = vmatpush1.bf16.msra.mxu1 %v4425_v43 }
 0x220   :  { %3701 = vmatprep.subr.bf16.mxu0 %v4440_v44  ;;  %3783 = vmatprep.subr.bf16.mxu1 %v4442_v45 }
 0x223   :  { %3702 = vmatpush1.bf16.msra.mxu0 %v4439_v50  ;;  %3784 = vmatpush1.bf16.msra.mxu1 %v4441_v51 }
 0x224   :  { %3703 = vmatprep.subr.bf16.mxu0 %v4456_v52  ;;  %3785 = vmatprep.subr.bf16.mxu1 %v4458_v53 }
 0x227   :  { %3704 = vmatpush1.bf16.msra.mxu0 %v4455_v54  ;;  %3786 = vmatpush1.bf16.msra.mxu1 %v4457_v55 }
 0x22a   :  { %3706 = vmatmul.mubr.bf16.vlgmr.msra.gmra.mrb[12].mxu0 %v4654_v59  ;;  %3788 = vmatmul.mubr.bf16.vlgmr.msra.gmra.mrb[12].mxu1 %v4654_v59 }
 0x27d   :  { %v3543_v3 = vpop.f32.mrb[8].mxu0  ;;  %v3625_v57 = vpop.f32.mrb[8].mxu1 }
 0x27e   :  { %v3545_v58 = vpop.f32.mrb[9].mxu0  ;;  %v3627_v20 = vpop.f32.mrb[9].mxu1 }
 0x27f   :  { %v4463_v60 = vpack.c.bf16 %v3545_v58, %v3543_v3  ;;  %v3547_v61 = vpop.f32.mrb[10].mxu0  ;;  %v4464_v62 = vpack.c.bf16 %v3627_v20, %v3625_v57  ;;  %v3629_v63 = vpop.f32.mrb[10].mxu1 }
 0x280   :  { %v3548_v0 = vpop.f32.mrb[11].mxu0  ;;  %v3630_v4 = vpop.f32.mrb[11].mxu1 }
 0x281   :  { %v3887_v2 = vrot.slane %v4463_v60, %v4629_v56  ;;  %v3894_v5 = vrot.slane %v4464_v62, %v4629_v56 }
 0x283   :  { %v3909_v6 = vcombine.low %v3887_v2, %v3894_v5 }
 0x285   :  { %v3917_v17 = vrot.slane %v3909_v6, %v4629_v56 }
 0x2fd   :  { %v3707_v8 = vpop.f32.mrb[12].mxu0  ;;  %v3789_v29 = vpop.f32.mrb[12].mxu1 }
 0x2fe   :  { %v3709_v9 = vpop.f32.mrb[13].mxu0  ;;  %v3791_v59 = vpop.f32.mrb[13].mxu1 }
 0x2ff   :  { %v4465_v1 = vpack.c.bf16 %v3709_v9, %v3707_v8  ;;  %v3711_v7 = vpop.f32.mrb[14].mxu0  ;;  %v4466_v11 = vpack.c.bf16 %v3791_v59, %v3789_v29  ;;  %v3793_v10 = vpop.f32.mrb[14].mxu1 }
 0x300   :  { %v3712_v12 = vpop.f32.mrb[15].mxu0  ;;  %v3794_v14 = vpop.f32.mrb[15].mxu1 }
 0x301   :  { %v3901_v13 = vrot.slane %v4465_v1, %v4629_v56  ;;  %v3908_v15 = vrot.slane %v4466_v11, %v4629_v56 }
 0x303   :  { %v3910_v16 = vcombine.low %v3901_v13, %v3908_v15 }
 0x305   :  { %v3924_v18 = vrot.slane %v3910_v16, %v4629_v56 }
 0x307   :  { %v3925_v19 = vcombine.low %v3917_v17, %v3924_v18 }
 0x309   :  { %3929 = vst [vmem:[#allocation7 + $0x8] sm:$0xff] %v3925_v19 }
 0x30a   :  { %4560 = shalt.err (!%p4557_p6)
}
 0x30b   :  { %s4561_s10 = scalar_lea.hbm %s4717_s2, 256 }
 0x30c   :  { %p4562_p7 = scmp.ne.s32.totalorder %s4717_s2, %s4561_s10  ;;  %p4565_p8 = scmp.lt.u32.totalorder %s4561_s10, %s4717_s2 }
 0x30e   :  { %p4567_p9 = pnand %p4565_p8, %p4562_p7 }
 0x310   :  { %4570 = shalt.err (!%p4567_p9)
}
 0x311   :  { %3939 = dma.vmem_to_hbm [thread:$0]  %s3937_s6, 256, %s4717_s2, [#allocation4]  }
 0x312   :  { %4575 = dma.done.wait [#allocation4], 256  }
 0x313   :  { %4576 = vsyncadd [#allocation4], 4294967040 }
 0x314   :  { %3943 = vsyncpa [#allocation3], 1 }
 0x315   :  { %3944 = vsyncpa [#allocation6], 1 }
 0x316   :  { %3945 = vsyncpa [#allocation4], 1 }

</bundles_post_ra>
